<compile_context>
chip_gen: v7x
topology: tpu7x:2x2x1
jax: 0.10.0
libtpu: 0.0.40
codegen_flags: <defaults>
</compile_context>

<pallas_src>
import functools

import jax
import jax.numpy as jnp
from jax.experimental import pallas as pl
from jax.experimental.pallas import tpu as pltpu


def _round_up(x, m):
    return (x + m - 1) // m * m


# ----------------------------------------------------------------------------
# Kernel 1: gate projection + softmax  (scores = softmax(x @ Wg + bg))
# bf16 matmul inputs, f32 accumulation, f32 softmax.  The E axis is padded to a
# multiple of 128 lanes (pad columns carry bias -1e30 so their softmax weight
# underflows to exactly 0) so stores are lane-dense.
# ----------------------------------------------------------------------------
def gate_kernel(x_ref, wg_ref, bg_ref, scores_ref):
    logits = jnp.dot(x_ref[...], wg_ref[...],
                     preferred_element_type=jnp.float32) + bg_ref[...]
    m = jnp.max(logits, axis=-1, keepdims=True)
    e = jnp.exp(logits - m)
    scores_ref[...] = e / jnp.sum(e, axis=-1, keepdims=True)


def gate_scores(x_flat, w_gate, b_gate, *, tm=512):
    # x_flat: (T, D), w_gate: (D, E), b_gate: (1, E) -> scores (T, E) f32
    T, D = x_flat.shape
    E = w_gate.shape[1]
    E_pad = _round_up(E, 128)
    if E_pad != E:
        w_gate = jnp.pad(w_gate, ((0, 0), (0, E_pad - E)))
        b_gate = jnp.pad(b_gate, ((0, 0), (0, E_pad - E)),
                         constant_values=-1e30)

    tm = min(tm, _round_up(T, 8))          # token tile (multiple of 8 sublanes)
    T_pad = _round_up(T, tm)
    if T_pad != T:
        x_flat = jnp.pad(x_flat, ((0, T_pad - T), (0, 0)))

    grid_spec = pltpu.PrefetchScalarGridSpec(
        num_scalar_prefetch=0,
        grid=(T_pad // tm,),
        in_specs=[
            pl.BlockSpec((tm, D), lambda i: (i, 0)),        # token tile
            pl.BlockSpec((D, E_pad), lambda i: (0, 0)),     # Wg resident
            pl.BlockSpec((1, E_pad), lambda i: (0, 0)),     # bg resident
        ],
        out_specs=pl.BlockSpec((tm, E_pad), lambda i: (i, 0)),
    )
    scores = pl.pallas_call(
        gate_kernel,
        out_shape=jax.ShapeDtypeStruct((T_pad, E_pad), jnp.float32),
        grid_spec=grid_spec,
        compiler_params=pltpu.CompilerParams(
            dimension_semantics=("parallel",)),
    )(x_flat.astype(jnp.bfloat16), w_gate.astype(jnp.bfloat16), b_gate)
    return scores[:T, :E]


# ----------------------------------------------------------------------------
# Kernel 2: token-grouped expert MLP with H-tiling.
#   Grid = (row_block b, hidden tile h).  The expert id per row block comes
#   from scalar-prefetch array `be_ref` (drives weight index_maps); the
#   per-block valid-row count `cnt_ref` gates compute on all-padding blocks.
#   Partial down-projections accumulate into a (blk, D) f32 VMEM scratch.
# ----------------------------------------------------------------------------
def expert_kernel(be_ref, cnt_ref, x_ref, wg_ref, bg_ref, wu_ref, bu_ref,
                  wd_ref, bd_ref, cw_ref, y_ref, acc_ref):
    h = pl.program_id(1)
    nh = pl.num_programs(1)
    has_rows = cnt_ref[pl.program_id(0)] > 0

    @pl.when(h == 0)
    def _():
        acc_ref[...] = jnp.zeros_like(acc_ref)

    @pl.when(has_rows)
    def _():
        x = x_ref[...]                                                # (blk, D) bf16
        g = jnp.dot(x, wg_ref[0], preferred_element_type=jnp.float32) + bg_ref[0]
        u = jnp.dot(x, wu_ref[0], preferred_element_type=jnp.float32) + bu_ref[0]
        hact = (g * (u * jax.nn.sigmoid(u))).astype(jnp.bfloat16)     # (blk, th)
        acc_ref[...] += jnp.dot(hact, wd_ref[0],
                                preferred_element_type=jnp.float32)   # (blk, D)

    @pl.when(h == nh - 1)
    def _():
        y = acc_ref[...] + bd_ref[0]
        # Skip branch MUST emit zeros so stale VMEM is never DMA'd out and
        # scatter-added into token 0.
        y_ref[...] = jnp.where(has_rows, cw_ref[...] * y,
                               jnp.zeros_like(y)).astype(y_ref.dtype)


def _pick_th(H, th):
    if th is not None:
        return min(th, H)
    for cand in (512, 256, 128):
        if H % cand == 0:
            return cand
    return H


def moe_experts_grouped(x_grp, cw_grp, block_expert, block_valid,
                        w_gate, b_gate, w_up, b_up, w_down, b_down, *,
                        blk, th=None):
    # x_grp: (P, D) bf16 (expert-sorted, zero-padded rows)
    # cw_grp: (P, 1) f32 combine weight per row (0 for pad rows)
    # block_expert: (P//blk,) int32 expert id per row block (scalar prefetch)
    # block_valid:  (P//blk,) int32 valid-row count per row block (scalar prefetch)
    # w_gate/w_up: (E, D, H) bf16; b_gate/b_up: (E, 1, H) f32
    # w_down: (E, H, D) bf16;      b_down: (E, 1, D) f32
    P, D = x_grp.shape
    E, _, H = w_gate.shape
    nblk = P // blk
    th = _pick_th(H, th)
    nh = H // th

    # VMEM budget: double-buffered weight/x/y tiles + f32 accumulator + biases.
    working_set = (2 * (3 * D * th) * 2         # bf16 weight tiles (gate/up/down)
                   + 2 * blk * D * 2            # x tiles (bf16)
                   + 2 * blk * D * 2            # y tiles (bf16)
                   + blk * D * 4                # f32 accumulator
                   + 2 * blk * 4                # combine weights
                   + 2 * (2 * th + th + 2 * D) * 4)  # biases
    vmem_limit = int(min(max(2 * working_set, 16 * 1024 * 1024),
                         64 * 1024 * 1024))     # stay under v7x physical VMEM

    grid_spec = pltpu.PrefetchScalarGridSpec(
        num_scalar_prefetch=2,
        grid=(nblk, nh),
        in_specs=[
            pl.BlockSpec((blk, D), lambda b, h, be, cnt: (b, 0)),           # x rows
            pl.BlockSpec((1, D, th), lambda b, h, be, cnt: (be[b], 0, h)),  # w_gate[e]
            pl.BlockSpec((1, 1, th), lambda b, h, be, cnt: (be[b], 0, h)),  # b_gate[e]
            pl.BlockSpec((1, D, th), lambda b, h, be, cnt: (be[b], 0, h)),  # w_up[e]
            pl.BlockSpec((1, 1, th), lambda b, h, be, cnt: (be[b], 0, h)),  # b_up[e]
            pl.BlockSpec((1, th, D), lambda b, h, be, cnt: (be[b], h, 0)),  # w_down[e]
            pl.BlockSpec((1, 1, D), lambda b, h, be, cnt: (be[b], 0, 0)),   # b_down[e]
            pl.BlockSpec((blk, 1), lambda b, h, be, cnt: (b, 0)),           # combine w
        ],
        out_specs=pl.BlockSpec((blk, D), lambda b, h, be, cnt: (b, 0)),
        scratch_shapes=[pltpu.VMEM((blk, D), jnp.float32)],
    )
    return pl.pallas_call(
        expert_kernel,
        out_shape=jax.ShapeDtypeStruct((P, D), jnp.bfloat16),
        grid_spec=grid_spec,
        compiler_params=pltpu.CompilerParams(
            dimension_semantics=("parallel", "arbitrary"),
            vmem_limit_bytes=vmem_limit),
    )(block_expert, block_valid, x_grp, w_gate, b_gate, w_up, b_up,
      w_down, b_down, cw_grp)


# ----------------------------------------------------------------------------
# Full DeepSeekMoE forward (gate kernel + JAX routing glue + grouped kernel)
# ----------------------------------------------------------------------------
def deepseek_moe_forward(x, params, *, top_k, capacity_factor, alpha,
                         blk=256, th=None):
    B, S, D = x.shape
    E = params["wg_gate"].shape[1]
    T = B * S
    K = top_k
    x_flat = x.reshape(T, D)

    # --- gate: linear + softmax (Pallas) ---
    scores = gate_scores(x_flat, params["wg_gate"], params["bg_gate"])  # (T, E)

    # --- top-k + normalization + aux loss (plain JAX glue) ---
    topk_w, topk_idx = jax.lax.top_k(scores, K)                         # (T, K)
    topk_w = topk_w / (jnp.sum(topk_w, axis=-1, keepdims=True) + 1e-9)  # norm_topk_prob

    flat_e = topk_idx.reshape(-1).astype(jnp.int32)                     # (T*K,)
    flat_w = topk_w.reshape(-1)                                         # (T*K,)
    counts = jnp.bincount(flat_e, length=E).astype(jnp.int32)           # (E,)
    load = counts.astype(jnp.float32)
    capacity = capacity_factor * (T * K) / E
    aux_loss = alpha * (jnp.sum(jnp.maximum(load - capacity, 0.0)) / E / (B * S))

    # --- token grouping by expert (sort + pack into blk-padded groups) ---
    order = jnp.argsort(flat_e)                                         # stable
    se = flat_e[order]                                                  # sorted expert ids
    sw = flat_w[order]                                                  # sorted combine wts
    st = (jnp.arange(T * K, dtype=jnp.int32) // K)[order]               # sorted token ids

    group_off = jnp.cumsum(counts) - counts                             # exclusive
    padded = ((counts + blk - 1) // blk) * blk
    padded_off = jnp.cumsum(padded) - padded                            # exclusive
    pos = jnp.arange(T * K, dtype=jnp.int32) - group_off[se]
    dest = padded_off[se] + pos                                         # (T*K,)

    P = _round_up(T * K, blk) + E * blk        # static upper bound on packed rows
    nblk = P // blk
    block_start = jnp.arange(nblk, dtype=jnp.int32) * blk
    group_end = padded_off + padded
    block_expert = jnp.minimum(
        jnp.sum(block_start[:, None] >= group_end[None, :], axis=1),
        E - 1).astype(jnp.int32)                                        # (nblk,)

    valid = jnp.zeros((P,), jnp.int32).at[dest].set(1)
    block_valid = valid.reshape(nblk, blk).sum(axis=1).astype(jnp.int32)

    x_grp = jnp.zeros((P, D), jnp.bfloat16).at[dest].set(
        x_flat[st].astype(jnp.bfloat16))
    cw_grp = jnp.zeros((P, 1), jnp.float32).at[dest].set(sw[:, None])
    tok_grp = jnp.zeros((P,), jnp.int32).at[dest].set(st)

    # --- routed expert MLPs (Pallas hot path, bf16 matmuls, H-tiled) ---
    y_grp = moe_experts_grouped(
        x_grp, cw_grp, block_expert, block_valid,
        params["w_gate"].astype(jnp.bfloat16), params["b_gate"],
        params["w_up"].astype(jnp.bfloat16), params["b_up"],
        params["w_down"].astype(jnp.bfloat16), params["b_down"],
        blk=blk, th=th)

    # scatter-add weighted expert outputs back to token order (pad rows are 0)
    out_flat = jnp.zeros((T, D), jnp.float32).at[tok_grp].add(
        y_grp.astype(jnp.float32))
    # TODO(synk): shared_expert path omitted (open_shared_expert=False default).
    return out_flat.reshape(B, S, D), aux_loss


# ----------------------------------------------------------------------------
# Deterministic parameter init (synthetic; shapes follow the nn.Module)
# ----------------------------------------------------------------------------
def init_params(key, d_model, hidden_dim, num_experts):
    ks = jax.random.split(key, 8)
    def u(k, shape, fan_in):
        bound = 1.0 / jnp.sqrt(fan_in)
        return jax.random.uniform(k, shape, jnp.float32, -bound, bound)
    return {
        # router gate Linear(d_model -> num_experts), stored as (in, out)
        "wg_gate": u(ks[0], (d_model, num_experts), d_model),
        "bg_gate": u(ks[1], (1, num_experts), d_model),
        # per-expert MLP weights, stacked on leading expert axis, (in, out)
        "w_gate": u(ks[2], (num_experts, d_model, hidden_dim), d_model),
        "b_gate": u(ks[3], (num_experts, 1, hidden_dim), d_model),
        "w_up":   u(ks[4], (num_experts, d_model, hidden_dim), d_model),
        "b_up":   u(ks[5], (num_experts, 1, hidden_dim), d_model),
        "w_down": u(ks[6], (num_experts, hidden_dim, d_model), hidden_dim),
        "b_down": u(ks[7], (num_experts, 1, d_model), hidden_dim),
    }


# ----------------------------------------------------------------------------
# Pure-JAX reference (mirrors the PyTorch forward, with the same bf16 casts on
# matmul inputs so tolerances stay tight)
# ----------------------------------------------------------------------------
def reference_forward(x, params, *, top_k, capacity_factor, alpha):
    B, S, D = x.shape
    E = params["wg_gate"].shape[1]
    T = B * S
    x_flat = x.reshape(T, D)
    logits = jnp.dot(x_flat.astype(jnp.bfloat16),
                     params["wg_gate"].astype(jnp.bfloat16),
                     preferred_element_type=jnp.float32) + params["bg_gate"]
    scores = jax.nn.softmax(logits, axis=-1)
    topk_w, topk_idx = jax.lax.top_k(scores, top_k)
    topk_w = topk_w / (jnp.sum(topk_w, axis=-1, keepdims=True) + 1e-9)
    one_hot = jax.nn.one_hot(topk_idx, E, dtype=jnp.float32)
    load = jnp.sum(one_hot.reshape(-1, E), axis=0)
    capacity = capacity_factor * (T * top_k) / E
    aux = alpha * (jnp.sum(jnp.maximum(load - capacity, 0.0)) / E / (B * S))
    combine = jnp.sum(one_hot * topk_w[..., None], axis=1)              # (T, E)

    xb = x_flat.astype(jnp.bfloat16)
    out = jnp.zeros((T, D), jnp.float32)
    for e in range(E):
        g = jnp.dot(xb, params["w_gate"][e].astype(jnp.bfloat16),
                    preferred_element_type=jnp.float32) + params["b_gate"][e]
        u_ = jnp.dot(xb, params["w_up"][e].astype(jnp.bfloat16),
                     preferred_element_type=jnp.float32) + params["b_up"][e]
        h = g * (u_ * jax.nn.sigmoid(u_))
        y = jnp.dot(h.astype(jnp.bfloat16), params["w_down"][e].astype(jnp.bfloat16),
                    preferred_element_type=jnp.float32) + params["b_down"][e]
        out = out + combine[:, e:e + 1] * y
    return out.reshape(B, S, D), aux


if __name__ == "__main__":
    B, S, D, H, E, K = 2, 8, 32, 64, 8, 2
    capacity_factor, alpha = 1.5, 0.01

    key = jax.random.PRNGKey(0)
    kx, kp = jax.random.split(key)
    x = jax.random.normal(kx, (B, S, D), jnp.float32)
    params = init_params(kp, D, H, E)

    fwd = jax.jit(functools.partial(
        deepseek_moe_forward, top_k=K,
        capacity_factor=capacity_factor, alpha=alpha))
    out, aux = fwd(x, params)
    out = jax.block_until_ready(out)
    aux = jax.block_until_ready(aux)

    ref_out, ref_aux = reference_forward(
        x, params, top_k=K, capacity_factor=capacity_factor, alpha=alpha)
    assert out.shape == (B, S, D)
    assert jnp.allclose(out, ref_out, atol=1e-2, rtol=1e-2)
    assert jnp.allclose(aux, ref_aux, atol=1e-6)

    print("KERNEL_OK")
</pallas_src>

<mosaic_0001>
module attributes {stable_mosaic.version = 11 : i64} {
  func.func private @main(%arg0: i32) attributes {dimension_semantics = [#tpu.dimension_semantics<core_parallel>], iteration_bounds = array<i64: 2>, tpu.core_type = #tpu.core_type<sc_scalar_subcore>, window_params = []} {
    return
  }
}

module attributes {stable_mosaic.version = 11 : i64} {
  func.func private @main(%arg0: i32) attributes {dimension_semantics = [#tpu.dimension_semantics<core_parallel>], iteration_bounds = array<i64: 2>, tpu.core_type = #tpu.core_type<sc_scalar_subcore>, window_params = []} {
    return
  }
}

module attributes {stable_mosaic.version = 11 : i64} {
  func.func @gate_kernel(%arg0: i32, %arg1: memref<16x32xbf16, #tpu.memory_space<vmem>>, %arg2: memref<32x128xbf16, #tpu.memory_space<vmem>>, %arg3: memref<1x128xf32, #tpu.memory_space<vmem>>, %arg4: memref<16x128xf32, #tpu.memory_space<vmem>>) attributes {dimension_semantics = [#tpu.dimension_semantics<parallel>], iteration_bounds = array<i64: 1>, scalar_prefetch = 0 : i64, scratch_operands = 0 : i64, tpu.core_type = #tpu.core_type<tc>, window_params = [{transform_indices = @transform_0, window_bounds = array<i64: 16, 32>}, {pipeline_mode = #tpu.pipeline_mode<synchronous>, transform_indices = @transform_1, window_bounds = array<i64: 32, 128>}, {pipeline_mode = #tpu.pipeline_mode<synchronous>, transform_indices = @transform_2, window_bounds = array<i64: 1, 128>}, {transform_indices = @transform_3, window_bounds = array<i64: 16, 128>}]} {
    %c0 = arith.constant 0 : index
    %c0_0 = arith.constant 0 : index
    %0 = vector.load %arg1[%c0, %c0_0] : memref<16x32xbf16, #tpu.memory_space<vmem>>, vector<16x32xbf16>
    %c0_1 = arith.constant 0 : index
    %c0_2 = arith.constant 0 : index
    %1 = vector.load %arg2[%c0_1, %c0_2] : memref<32x128xbf16, #tpu.memory_space<vmem>>, vector<32x128xbf16>
    %cst = arith.constant dense<0.000000e+00> : vector<16x128xf32>
    %2 = tpu.matmul %0, %1, %cst {dimension_numbers = #tpu.dot_dimension_numbers<[1], [0], [0], [1], [0, 0, 1, 1], [], []>} : vector<16x32xbf16>, vector<32x128xbf16>, vector<16x128xf32> -> vector<16x128xf32>
    %c0_3 = arith.constant 0 : index
    %c0_4 = arith.constant 0 : index
    %3 = vector.load %arg3[%c0_3, %c0_4] : memref<1x128xf32, #tpu.memory_space<vmem>>, vector<1x128xf32>
    %4 = vector.broadcast %3 : vector<1x128xf32> to vector<16x128xf32>
    %5 = arith.addf %2, %4 : vector<16x128xf32>
    %cst_5 = arith.constant dense<0xFF800000> : vector<16xf32>
    %6 = vector.multi_reduction <maximumf>, %5, %cst_5 [1] : vector<16x128xf32> to vector<16xf32>
    %7 = vector.shape_cast %6 : vector<16xf32> to vector<16x1xf32>
    %8 = vector.broadcast %7 : vector<16x1xf32> to vector<16x128xf32>
    %9 = arith.subf %5, %8 : vector<16x128xf32>
    %10 = math.exp %9 : vector<16x128xf32>
    %cst_6 = arith.constant dense<0.000000e+00> : vector<16xf32>
    %11 = vector.multi_reduction <add>, %10, %cst_6 [1] : vector<16x128xf32> to vector<16xf32>
    %12 = vector.shape_cast %11 : vector<16xf32> to vector<16x1xf32>
    %13 = vector.broadcast %12 : vector<16x1xf32> to vector<16x128xf32>
    %14 = arith.divf %10, %13 : vector<16x128xf32>
    %c0_7 = arith.constant 0 : index
    %c0_8 = arith.constant 0 : index
    %15 = vector.load %arg4[%c0_7, %c0_8] : memref<16x128xf32, #tpu.memory_space<vmem>>, vector<16x128xf32>
    tpu.vector_store %arg4[%c0_7, %c0_8], %14 {strides = array<i32>} : memref<16x128xf32, #tpu.memory_space<vmem>>, vector<16x128xf32>,
    return
  }
  func.func @transform_0(%arg0: i32) -> (i32, i32) {
    %c0_i32 = arith.constant 0 : i32
    %c0_i32_0 = arith.constant 0 : i32
    return %arg0, %c0_i32 : i32, i32
  }
  func.func @transform_1(%arg0: i32) -> (i32, i32) {
    %c0_i32 = arith.constant 0 : i32
    %c0_i32_0 = arith.constant 0 : i32
    %c0_i32_1 = arith.constant 0 : i32
    return %c0_i32, %c0_i32_0 : i32, i32
  }
  func.func @transform_2(%arg0: i32) -> (i32, i32) {
    %c0_i32 = arith.constant 0 : i32
    %c0_i32_0 = arith.constant 0 : i32
    %c0_i32_1 = arith.constant 0 : i32
    return %c0_i32, %c0_i32_0 : i32, i32
  }
  func.func @transform_3(%arg0: i32) -> (i32, i32) {
    %c0_i32 = arith.constant 0 : i32
    %c0_i32_0 = arith.constant 0 : i32
    return %arg0, %c0_i32 : i32, i32
  }
}

module attributes {stable_mosaic.version = 11 : i64} {
  func.func @expert_kernel(%arg0: i32, %arg1: i32, %arg2: memref<9xi32, #tpu.memory_space<smem>>, %arg3: memref<9xi32, #tpu.memory_space<smem>>, %arg4: memref<256x32xbf16, #tpu.memory_space<vmem>>, %arg5: memref<1x32x64xbf16, #tpu.memory_space<vmem>>, %arg6: memref<1x1x64xf32, #tpu.memory_space<vmem>>, %arg7: memref<1x32x64xbf16, #tpu.memory_space<vmem>>, %arg8: memref<1x1x64xf32, #tpu.memory_space<vmem>>, %arg9: memref<1x64x32xbf16, #tpu.memory_space<vmem>>, %arg10: memref<1x1x32xf32, #tpu.memory_space<vmem>>, %arg11: memref<256x1xf32, #tpu.memory_space<vmem>>, %arg12: memref<256x32xbf16, #tpu.memory_space<vmem>>, %arg13: memref<256x32xf32, #tpu.memory_space<vmem>>) attributes {dimension_semantics = [#tpu.dimension_semantics<parallel>, #tpu.dimension_semantics<arbitrary>], iteration_bounds = array<i64: 9, 1>, scalar_prefetch = 2 : i64, scratch_operands = 1 : i64, tpu.core_type = #tpu.core_type<tc>, window_params = [{transform_indices = @transform_0, window_bounds = array<i64: 256, 32>}, {transform_indices = @transform_1, window_bounds = array<i64: 1, 32, 64>}, {transform_indices = @transform_2, window_bounds = array<i64: 1, 1, 64>}, {transform_indices = @transform_3, window_bounds = array<i64: 1, 32, 64>}, {transform_indices = @transform_4, window_bounds = array<i64: 1, 1, 64>}, {transform_indices = @transform_5, window_bounds = array<i64: 1, 64, 32>}, {transform_indices = @transform_6, window_bounds = array<i64: 1, 1, 32>}, {transform_indices = @transform_7, window_bounds = array<i64: 256, 1>}, {transform_indices = @transform_8, window_bounds = array<i64: 256, 32>}]} {
    %0 = arith.index_cast %arg0 : i32 to index
    %1 = memref.load %arg3[%0] : memref<9xi32, #tpu.memory_space<smem>>
    %c0_i32 = arith.constant 0 : i32
    %2 = arith.cmpi sgt, %1, %c0_i32 : i32
    %c0_i32_0 = arith.constant 0 : i32
    %3 = arith.cmpi eq, %arg1, %c0_i32_0 : i32
    %4 = arith.extui %3 : i1 to i32
    %c0_i32_1 = arith.constant 0 : i32
    %5 = arith.cmpi ne, %4, %c0_i32_1 : i32
    scf.if %5 {
      %cst = arith.constant 0.000000e+00 : f32
      %11 = vector.broadcast %cst : f32 to vector<256x32xf32>
      %c0 = arith.constant 0 : index
      %c0_5 = arith.constant 0 : index
      %12 = vector.load %arg13[%c0, %c0_5] : memref<256x32xf32, #tpu.memory_space<vmem>>, vector<256x32xf32>
      tpu.vector_store %arg13[%c0, %c0_5], %11 {strides = array<i32>} : memref<256x32xf32, #tpu.memory_space<vmem>>, vector<256x32xf32>,
    } else {
    }
    %6 = arith.extui %2 : i1 to i32
    %c0_i32_2 = arith.constant 0 : i32
    %7 = arith.cmpi ne, %6, %c0_i32_2 : i32
    scf.if %7 {
      %c0 = arith.constant 0 : index
      %c0_5 = arith.constant 0 : index
      %11 = vector.load %arg4[%c0, %c0_5] : memref<256x32xbf16, #tpu.memory_space<vmem>>, vector<256x32xbf16>
      %c0_6 = arith.constant 0 : index
      %c0_7 = arith.constant 0 : index
      %c0_8 = arith.constant 0 : index
      %12 = vector.load %arg5[%c0_6, %c0_7, %c0_8] : memref<1x32x64xbf16, #tpu.memory_space<vmem>>, vector<1x32x64xbf16>
      %13 = vector.shape_cast %12 : vector<1x32x64xbf16> to vector<32x64xbf16>
      %cst = arith.constant dense<0.000000e+00> : vector<256x64xf32>
      %14 = tpu.matmul %11, %13, %cst {dimension_numbers = #tpu.dot_dimension_numbers<[1], [0], [0], [1], [0, 0, 1, 1], [], []>} : vector<256x32xbf16>, vector<32x64xbf16>, vector<256x64xf32> -> vector<256x64xf32>
      %c0_9 = arith.constant 0 : index
      %c0_10 = arith.constant 0 : index
      %c0_11 = arith.constant 0 : index
      %15 = vector.load %arg6[%c0_9, %c0_10, %c0_11] : memref<1x1x64xf32, #tpu.memory_space<vmem>>, vector<1x1x64xf32>
      %16 = vector.shape_cast %15 : vector<1x1x64xf32> to vector<1x64xf32>
      %17 = vector.broadcast %16 : vector<1x64xf32> to vector<256x64xf32>
      %18 = arith.addf %14, %17 : vector<256x64xf32>
      %c0_12 = arith.constant 0 : index
      %c0_13 = arith.constant 0 : index
      %c0_14 = arith.constant 0 : index
      %19 = vector.load %arg7[%c0_12, %c0_13, %c0_14] : memref<1x32x64xbf16, #tpu.memory_space<vmem>>, vector<1x32x64xbf16>
      %20 = vector.shape_cast %19 : vector<1x32x64xbf16> to vector<32x64xbf16>
      %cst_15 = arith.constant dense<0.000000e+00> : vector<256x64xf32>
      %21 = tpu.matmul %11, %20, %cst_15 {dimension_numbers = #tpu.dot_dimension_numbers<[1], [0], [0], [1], [0, 0, 1, 1], [], []>} : vector<256x32xbf16>, vector<32x64xbf16>, vector<256x64xf32> -> vector<256x64xf32>
      %c0_16 = arith.constant 0 : index
      %c0_17 = arith.constant 0 : index
      %c0_18 = arith.constant 0 : index
      %22 = vector.load %arg8[%c0_16, %c0_17, %c0_18] : memref<1x1x64xf32, #tpu.memory_space<vmem>>, vector<1x1x64xf32>
      %23 = vector.shape_cast %22 : vector<1x1x64xf32> to vector<1x64xf32>
      %24 = vector.broadcast %23 : vector<1x64xf32> to vector<256x64xf32>
      %25 = arith.addf %21, %24 : vector<256x64xf32>
      %26 = arith.negf %25 : vector<256x64xf32>
      %27 = math.exp %26 : vector<256x64xf32>
      %cst_19 = arith.constant 1.000000e+00 : f32
      %28 = vector.broadcast %cst_19 : f32 to vector<256x64xf32>
      %29 = arith.addf %28, %27 : vector<256x64xf32>
      %30 = arith.divf %28, %29 : vector<256x64xf32>
      %31 = arith.mulf %25, %30 : vector<256x64xf32>
      %32 = arith.mulf %18, %31 : vector<256x64xf32>
      %33 = arith.truncf %32 : vector<256x64xf32> to vector<256x64xbf16>
      %c0_20 = arith.constant 0 : index
      %c0_21 = arith.constant 0 : index
      %34 = vector.load %arg13[%c0_20, %c0_21] : memref<256x32xf32, #tpu.memory_space<vmem>>, vector<256x32xf32>
      %c0_22 = arith.constant 0 : index
      %c0_23 = arith.constant 0 : index
      %c0_24 = arith.constant 0 : index
      %35 = vector.load %arg9[%c0_22, %c0_23, %c0_24] : memref<1x64x32xbf16, #tpu.memory_space<vmem>>, vector<1x64x32xbf16>
      %36 = vector.shape_cast %35 : vector<1x64x32xbf16> to vector<64x32xbf16>
      %cst_25 = arith.constant dense<0.000000e+00> : vector<256x32xf32>
      %37 = tpu.matmul %33, %36, %cst_25 {dimension_numbers = #tpu.dot_dimension_numbers<[1], [0], [0], [1], [0, 0, 1, 1], [], []>} : vector<256x64xbf16>, vector<64x32xbf16>, vector<256x32xf32> -> vector<256x32xf32>
      %38 = arith.addf %34, %37 : vector<256x32xf32>
      %c0_26 = arith.constant 0 : index
      %c0_27 = arith.constant 0 : index
      %39 = vector.load %arg13[%c0_26, %c0_27] : memref<256x32xf32, #tpu.memory_space<vmem>>, vector<256x32xf32>
      tpu.vector_store %arg13[%c0_26, %c0_27], %38 {strides = array<i32>} : memref<256x32xf32, #tpu.memory_space<vmem>>, vector<256x32xf32>,
    } else {
    }
    %c0_i32_3 = arith.constant 0 : i32
    %8 = arith.cmpi eq, %arg1, %c0_i32_3 : i32
    %9 = arith.extui %8 : i1 to i32
    %c0_i32_4 = arith.constant 0 : i32
    %10 = arith.cmpi ne, %9, %c0_i32_4 : i32
    scf.if %10 {
      %c0 = arith.constant 0 : index
      %c0_5 = arith.constant 0 : index
      %11 = vector.load %arg13[%c0, %c0_5] : memref<256x32xf32, #tpu.memory_space<vmem>>, vector<256x32xf32>
      %c0_6 = arith.constant 0 : index
      %c0_7 = arith.constant 0 : index
      %c0_8 = arith.constant 0 : index
      %12 = vector.load %arg10[%c0_6, %c0_7, %c0_8] : memref<1x1x32xf32, #tpu.memory_space<vmem>>, vector<1x1x32xf32>
      %13 = vector.shape_cast %12 : vector<1x1x32xf32> to vector<1x32xf32>
      %14 = vector.broadcast %13 : vector<1x32xf32> to vector<256x32xf32>
      %15 = arith.addf %11, %14 : vector<256x32xf32>
      %c0_9 = arith.constant 0 : index
      %c0_10 = arith.constant 0 : index
      %16 = vector.load %arg11[%c0_9, %c0_10] : memref<256x1xf32, #tpu.memory_space<vmem>>, vector<256x1xf32>
      %17 = vector.broadcast %16 : vector<256x1xf32> to vector<256x32xf32>
      %18 = arith.mulf %17, %15 : vector<256x32xf32>
      %cst = arith.constant 0.000000e+00 : f32
      %19 = vector.broadcast %cst : f32 to vector<256x32xf32>
      %20 = arith.select %2, %18, %19 : vector<256x32xf32>
      %21 = arith.truncf %20 : vector<256x32xf32> to vector<256x32xbf16>
      %c0_11 = arith.constant 0 : index
      %c0_12 = arith.constant 0 : index
      %22 = vector.load %arg12[%c0_11, %c0_12] : memref<256x32xbf16, #tpu.memory_space<vmem>>, vector<256x32xbf16>
      tpu.vector_store %arg12[%c0_11, %c0_12], %21 {strides = array<i32>} : memref<256x32xbf16, #tpu.memory_space<vmem>>, vector<256x32xbf16>,
    } else {
    }
    return
  }
  func.func @transform_0(%arg0: i32, %arg1: i32, %arg2: memref<9xi32, #tpu.memory_space<smem>>, %arg3: memref<9xi32, #tpu.memory_space<smem>>) -> (i32, i32) {
    %c0_i32 = arith.constant 0 : i32
    %c0_i32_0 = arith.constant 0 : i32
    return %arg0, %c0_i32 : i32, i32
  }
  func.func @transform_1(%arg0: i32, %arg1: i32, %arg2: memref<9xi32, #tpu.memory_space<smem>>, %arg3: memref<9xi32, #tpu.memory_space<smem>>) -> (i32, i32, i32) {
    %0 = arith.index_cast %arg0 : i32 to index
    %1 = memref.load %arg2[%0] : memref<9xi32, #tpu.memory_space<smem>>
    %c0_i32 = arith.constant 0 : i32
    %c0_i32_0 = arith.constant 0 : i32
    return %1, %c0_i32, %arg1 : i32, i32, i32
  }
  func.func @transform_2(%arg0: i32, %arg1: i32, %arg2: memref<9xi32, #tpu.memory_space<smem>>, %arg3: memref<9xi32, #tpu.memory_space<smem>>) -> (i32, i32, i32) {
    %0 = arith.index_cast %arg0 : i32 to index
    %1 = memref.load %arg2[%0] : memref<9xi32, #tpu.memory_space<smem>>
    %c0_i32 = arith.constant 0 : i32
    %c0_i32_0 = arith.constant 0 : i32
    return %1, %c0_i32, %arg1 : i32, i32, i32
  }
  func.func @transform_3(%arg0: i32, %arg1: i32, %arg2: memref<9xi32, #tpu.memory_space<smem>>, %arg3: memref<9xi32, #tpu.memory_space<smem>>) -> (i32, i32, i32) {
    %0 = arith.index_cast %arg0 : i32 to index
    %1 = memref.load %arg2[%0] : memref<9xi32, #tpu.memory_space<smem>>
    %c0_i32 = arith.constant 0 : i32
    %c0_i32_0 = arith.constant 0 : i32
    return %1, %c0_i32, %arg1 : i32, i32, i32
  }
  func.func @transform_4(%arg0: i32, %arg1: i32, %arg2: memref<9xi32, #tpu.memory_space<smem>>, %arg3: memref<9xi32, #tpu.memory_space<smem>>) -> (i32, i32, i32) {
    %0 = arith.index_cast %arg0 : i32 to index
    %1 = memref.load %arg2[%0] : memref<9xi32, #tpu.memory_space<smem>>
    %c0_i32 = arith.constant 0 : i32
    %c0_i32_0 = arith.constant 0 : i32
    return %1, %c0_i32, %arg1 : i32, i32, i32
  }
  func.func @transform_5(%arg0: i32, %arg1: i32, %arg2: memref<9xi32, #tpu.memory_space<smem>>, %arg3: memref<9xi32, #tpu.memory_space<smem>>) -> (i32, i32, i32) {
    %0 = arith.index_cast %arg0 : i32 to index
    %1 = memref.load %arg2[%0] : memref<9xi32, #tpu.memory_space<smem>>
    %c0_i32 = arith.constant 0 : i32
    %c0_i32_0 = arith.constant 0 : i32
    return %1, %arg1, %c0_i32 : i32, i32, i32
  }
  func.func @transform_6(%arg0: i32, %arg1: i32, %arg2: memref<9xi32, #tpu.memory_space<smem>>, %arg3: memref<9xi32, #tpu.memory_space<smem>>) -> (i32, i32, i32) {
    %0 = arith.index_cast %arg0 : i32 to index
    %1 = memref.load %arg2[%0] : memref<9xi32, #tpu.memory_space<smem>>
    %c0_i32 = arith.constant 0 : i32
    %c0_i32_0 = arith.constant 0 : i32
    %c0_i32_1 = arith.constant 0 : i32
    return %1, %c0_i32, %c0_i32_0 : i32, i32, i32
  }
  func.func @transform_7(%arg0: i32, %arg1: i32, %arg2: memref<9xi32, #tpu.memory_space<smem>>, %arg3: memref<9xi32, #tpu.memory_space<smem>>) -> (i32, i32) {
    %c0_i32 = arith.constant 0 : i32
    %c0_i32_0 = arith.constant 0 : i32
    return %arg0, %c0_i32 : i32, i32
  }
  func.func @transform_8(%arg0: i32, %arg1: i32, %arg2: memref<9xi32, #tpu.memory_space<smem>>, %arg3: memref<9xi32, #tpu.memory_space<smem>>) -> (i32, i32) {
    %c0_i32 = arith.constant 0 : i32
    %c0_i32_0 = arith.constant 0 : i32
    return %arg0, %c0_i32 : i32, i32
  }
}

</mosaic_0001>

<bundles_post_ra>
// kernel: deepseek_moe_forward.2
= control target key start
LH: loop header
LB: loop body
LE: loop exit
PB: predicated region body
PF: predicated region fallthrough
CT: control target
= control target key end

     0   :  { %v143_v0 = vmov 0.0   ;;  %vm144_vm0 = vmmov 0   ;;  %vm45_vm1 = vcmask 261120   ;;  %s183_s1 = inlined_call_operand.vmem [shape: bf16[32,128], index: 1, kind: input, shape index: {}]   ;;  %s184_s0 = inlined_call_operand.vmem [shape: bf16[16,32], index: 0, kind: input, shape index: {}]   ;;  %s185_s2 = inlined_call_operand.vmem [shape: f32[1,128], index: 2, kind: input, shape index: {}]   ;;  %s186_s3 = inlined_call_operand.vmem [shape: f32[16,128], index: 3, kind: output, shape index: {}]  }
   0x1   :  { %122 = vmatprep.subr.bf16.mxu0 %v143_v0  ;;  %v132_v1 = vld [vmem:[%s183_s1] sm:$0xff]   ;;  %126 = vmatprep.mubr.msk.bf16.mxu0 %vm144_vm0, %v143_v0  ;;  %v133_v2 = vld [vmem:[%s183_s1 + $0x8] sm:$0xff]  }
   0x2   :  { %123 = vmatpush3.bf16.msra.mxu0 %v132_v1  ;;  %v134_v3 = vld [vmem:[%s184_s0] sm:$0xff]  }
   0x3   :  { %124 = vmatprep.subr.bf16.mxu0 %v143_v0  ;;  %v114_v4 = vld [vmem:[%s185_s2] ss:$0 sm:$0xff] }
   0x6   :  { %125 = vmatpush3.bf16.msra.mxu0 %v133_v2 }
   0x9   :  { %127 = vmatmul.mubr.msk.bf16.vlgmr.msra.gmra.mrb[0].mxu0 %vm45_vm1, %v134_v3 }
  0xdc   :  { %v83_v5 = vpop.f32.mrb[0].mxu0 }
  0xdd   :  { %v84_v6 = vadd.f32 %v114_v4, %v83_v5  ;;  %v128_v7 = vpop.f32.mrb[1].mxu0 }
  0xde   :  { %v86_v8 = vpop.f32.mrb[2].mxu0 }
  0xdf   :  { %90 = vmax.xlane.f32.xlu0 %v84_v6  ;;  %v129_v9 = vpop.f32.mrb[3].mxu0  ;;  %v87_v10 = vadd.f32 %v114_v4, %v86_v8 }
  0xe3   :  { %92 = vmax.xlane.f32.xlu0 %v87_v10 }
 0x16c   :  { %v91_v11 = vpop.xlane.xlu0 %90 }
 0x16d   :  { %v94_v12 = vsub.f32 %v84_v6, %v91_v11 }
 0x16f   :  { %v96_v13 = vmul.f32 1.442695, %v94_v12 }
 0x170   :  { %v93_v14 = vpop.xlane.xlu0 %92 }
 0x171   :  { %135 = vpow2.f32 %v96_v13  ;;  %v95_v15 = vsub.f32 %v87_v10, %v93_v14 }
 0x173   :  { %v98_v16 = vmul.f32 1.442695, %v95_v15 }
 0x175   :  { %137 = vpow2.f32 %v98_v16 }
 0x17b   :  { %v136_v17 = vpop.eup %135 }
 0x17c   :  { %100 = vadd.xlane.f32.xlu1 %v136_v17 }
 0x17f   :  { %v138_v18 = vpop.eup %137 }
 0x180   :  { %102 = vadd.xlane.f32.xlu1 %v138_v18 }
 0x209   :  { %v101_v19 = vpop.xlane.xlu1 %100 }
 0x20a   :  { %139 = vrcp.f32 %v101_v19 }
 0x20d   :  { %v103_v20 = vpop.xlane.xlu1 %102 }
 0x20e   :  { %141 = vrcp.f32 %v103_v20 }
 0x214   :  { %v140_v21 = vpop.eup %139 }
 0x215   :  { %v105_v22 = vmul.f32 %v140_v21, %v136_v17 }
 0x217   :  { %108 = vst [vmem:[%s186_s3] sm:$0xff] %v105_v22 }
 0x218   :  { %v142_v23 = vpop.eup %141 }
 0x219   :  { %v107_v24 = vmul.f32 %v142_v23, %v138_v18 }
 0x21b   :  { %109 = vst [vmem:[%s186_s3 + $0x8] sm:$0xff] %v107_v24 }

// kernel: deepseek_moe_forward.3
= control target key start
LH: loop header
LB: loop body
LE: loop exit
PB: predicated region body
PF: predicated region fallthrough
CT: control target
= control target key end

     0   :  { %s3804_s0 = inlined_call_operand.vmem [shape: s32[9], index: 0, kind: input, shape index: {}]   ;;  %s3805_s2 = inlined_call_operand.vmem [shape: bf16[2304,32], index: 2, kind: input, shape index: {}]   ;;  %s3806_s3 = inlined_call_operand.vmem [shape: bf16[8,32,64], index: 3, kind: input, shape index: {}]   ;;  %s3807_s4 = inlined_call_operand.vmem [shape: f32[8,1,64], index: 4, kind: input, shape index: {}]   ;;  %s3808_s5 = inlined_call_operand.vmem [shape: bf16[8,32,64], index: 5, kind: input, shape index: {}]   ;;  %s3809_s6 = inlined_call_operand.vmem [shape: f32[8,1,64], index: 6, kind: input, shape index: {}]   ;;  %s3810_s7 = inlined_call_operand.vmem [shape: bf16[8,64,32], index: 7, kind: input, shape index: {}]   ;;  %s3811_s8 = inlined_call_operand.vmem [shape: f32[8,1,32], index: 8, kind: input, shape index: {}]   ;;  %s3812_s9 = inlined_call_operand.vmem [shape: f32[2304,1], index: 9, kind: input, shape index: {}]   ;;  %s3813_s10 = inlined_call_operand.vmem [shape: bf16[2304,32], index: 10, kind: output, shape index: {}]   ;;  %s3814_s1 = inlined_call_operand.vmem [shape: s32[9], index: 1, kind: input, shape index: {}]  }
   0x1   :  { %3816 = sst [smem:[#allocation11_spill]] %s3805_s2  ;;  %s15_s15 = sshll.u32 %s3804_s0, 4  ;;  %s16_s15 = int_to_ptr.vmem [resolvable:$true] %s15_s15 }
   0x2   :  { %3817 = sst [smem:[#allocation12_spill]] %s3812_s9  ;;  %s19_s18 = sshll.u32 %s3814_s1, 4  ;;  %s20_s18 = int_to_ptr.vmem [resolvable:$true] %s19_s18 }
   0x3   :  { %s2947_s19 = scalar_lea.vmem %s16_s15, 16  ;;  %p2952_p1 = scmp.lt.s32.totalorder %s16_s15, %s16_s15 }
   0x4   :  { %p2948_p0 = scmp.ne.s32.totalorder %s16_s15, %s2947_s19  ;;  %p2953_p2 = scmp.lt.s32.totalorder %s2947_s19, %s2947_s19 }
   0x6   :  { %p2954_p3 = por %p2953_p2, %p2952_p1 }
   0x8   :  { %p2955_p4 = pnand %p2954_p3, %p2948_p0 }
   0xa   :  { %2958 = shalt.err (!%p2955_p4)  }
   0xb   :  { %s2997_s20 = smov [#allocation4]   ;;  %s2959_s21 = scalar_lea.vmem %s20_s18, 16 }
   0xc   :  { %18 = dma.vmem_to_smem %s16_s15, 16, %s2997_s20, [#allocation3] }
   0xd   :  { %p2960_p5 = scmp.ne.s32.totalorder %s20_s18, %s2959_s21  ;;  %p2964_p6 = scmp.lt.s32.totalorder %s20_s18, %s20_s18 }
   0xe   :  { %p2965_p7 = scmp.lt.s32.totalorder %s2959_s21, %s2959_s21 }
  0x10   :  { %p2966_p8 = por %p2965_p7, %p2964_p6 }
  0x12   :  { %p2967_p9 = pnand %p2966_p8, %p2960_p5 }
  0x14   :  { %2970 = shalt.err (!%p2967_p9)  }
  0x15   :  { %s2998_s0 = smov [#allocation5]  }
  0x16   :  { %22 = dma.vmem_to_smem %s20_s18, 16, %s2998_s0, [#allocation3] }
  0x17   :  { %2983 = dma.done.wait [#allocation3], 32 }
  0x18   :  { %2984 = vsyncadd [#allocation3], 4294967264 }
  0x19   :  { %24 = sfence }
  0x1a   :  { %s3062_s1 = smov 0   ;;  %s3064_s22 = smov 0  }
  0x1b   :  { %s3066_s23 = smov 0  }
  0x1c LB: > { %3818 = sst [smem:[#allocation7_spill]] %s2991_s22  ;;  %s42_s24 = sadd.s32 1, %s2991_s22  ;;  %s2995_s23 = sphi %s3066_s23, %s30_s23   ;;  %s2991_s22 = sphi %s3064_s22, %s3830_s22   ;;  %s2987_s1 = sphi %s3062_s1, %s3829_s1  }
  0x1d   : > { %p2403_p10 = scmp.ge.s32.totalorder %s2995_s23, 1  ;;  %p44_p11 = scmp.ge.s32.totalorder %s42_s24, 9 }
  0x1e   : > { %p403_p12 = scmp.lt.s32.totalorder %s2995_s23, 10 }
  0x1f   : > { %s3832_s24 = smov (%p44_p11, %s42_s24), 0 }
  0x20   : > { %3819 = sst [smem:[#allocation8_spill]] %s3832_s24  ;;  %p404_p13 = pnand %p2403_p10, %p403_p12 }
  0x21   : > { %s2404_s25 = sshll.u32 (!%p404_p13), %s2987_s1, 5  ;;  %s3084_s26 = sld [smem:[#allocation4 + %s2987_s1]] (!%p404_p13)  ;;  %vm566_vm0 = vcmask (!%p404_p13), 261120   ;;  %v2999_v0 = vmov (!%p404_p13), 0.0  }
  0x22   : > { %407 = sbr.rel (%p404_p13) target bundleno = 831 (0x33f), region = 52  ;;  %p3088_p0 = scmp.lt.s32.totalorder (!%p404_p13), %s2404_s25, 287  ;;  %567 = vst.msk [vmem:[#allocation2] sm:$0xff] (!%p404_p13), %vm566_vm0, %v2999_v0  ;;  %568 = vst.msk [vmem:[#allocation2 + $0x8] sm:$0xff] (!%p404_p13), %vm566_vm0, %v2999_v0 }
  0x23   : > { %s3093_s28 = sld [smem:[#allocation4 + %s2987_s1]] (!%p404_p13)  ;;  %569 = vst.msk [vmem:[#allocation2 + $0x10] sm:$0xff] (!%p404_p13), %vm566_vm0, %v2999_v0  ;;  %570 = vst.msk [vmem:[#allocation2 + $0x18] sm:$0xff] (!%p404_p13), %vm566_vm0, %v2999_v0 }
  0x24   : > { %571 = vst.msk [vmem:[#allocation2 + $0x20] sm:$0xff] (!%p404_p13), %vm566_vm0, %v2999_v0  ;;  %572 = vst.msk [vmem:[#allocation2 + $0x28] sm:$0xff] (!%p404_p13), %vm566_vm0, %v2999_v0  ;;  %s512_s29 = sld [smem:[#allocation4 + %s2987_s1]] (!%p404_p13) }
  0x25   : > { %573 = vst.msk [vmem:[#allocation2 + $0x30] sm:$0xff] (!%p404_p13), %vm566_vm0, %v2999_v0  ;;  %574 = vst.msk [vmem:[#allocation2 + $0x38] sm:$0xff] (!%p404_p13), %vm566_vm0, %v2999_v0  ;;  %s522_s30 = sld [smem:[#allocation4 + %s2987_s1]] (!%p404_p13) }
  0x26   : > { %575 = vst.msk [vmem:[#allocation2 + $0x40] sm:$0xff] (!%p404_p13), %vm566_vm0, %v2999_v0  ;;  %576 = vst.msk [vmem:[#allocation2 + $0x48] sm:$0xff] (!%p404_p13), %vm566_vm0, %v2999_v0  ;;  %s530_s11 = sld [smem:[#allocation4 + %s2987_s1]] (!%p404_p13) }
  0x27   : > { %577 = vst.msk [vmem:[#allocation2 + $0x50] sm:$0xff] (!%p404_p13), %vm566_vm0, %v2999_v0  ;;  %578 = vst.msk [vmem:[#allocation2 + $0x58] sm:$0xff] (!%p404_p13), %vm566_vm0, %v2999_v0  ;;  %s542_s12 = sld [smem:[#allocation4 + %s2987_s1]] (!%p404_p13)  ;;  %p495_p1 = scmp.lt.s32.totalorder (!%p404_p13), %s3084_s26, 7 }
  0x28   : > { %579 = vst.msk [vmem:[#allocation2 + $0x60] sm:$0xff] (!%p404_p13), %vm566_vm0, %v2999_v0  ;;  %580 = vst.msk [vmem:[#allocation2 + $0x68] sm:$0xff] (!%p404_p13), %vm566_vm0, %v2999_v0  ;;  %s3821_s2 = sld [smem:[#allocation11_spill]] (!%p404_p13)  ;;  %s3822_s9 = sld [smem:[#allocation12_spill]] (!%p404_p13) }
  0x29   : > { %581 = vst.msk [vmem:[#allocation2 + $0x70] sm:$0xff] %vm566_vm0, %v2999_v0  ;;  %582 = vst.msk [vmem:[#allocation2 + $0x78] sm:$0xff] %vm566_vm0, %v2999_v0  ;;  %s3834_s25 = smov (!%p3088_p0, %s2404_s25), 287  ;;  %p505_p2 = scmp.lt.s32.totalorder %s3093_s28, 7 }
  0x2a   : > { %583 = vst.msk [vmem:[#allocation2 + $0x80] sm:$0xff] %vm566_vm0, %v2999_v0  ;;  %584 = vst.msk [vmem:[#allocation2 + $0x88] sm:$0xff] %vm566_vm0, %v2999_v0  ;;  %s2405_s13 = sshll.u32 %s3834_s25, 2  ;;  %s2413_s14 = sshll.u32 %s3834_s25, 3 }
  0x2b   : > { %585 = vst.msk [vmem:[#allocation2 + $0x90] sm:$0xff] %vm566_vm0, %v2999_v0  ;;  %586 = vst.msk [vmem:[#allocation2 + $0x98] sm:$0xff] %vm566_vm0, %v2999_v0  ;;  %s3836_s26 = smov (!%p495_p1, %s3084_s26), 7  ;;  %s3838_s28 = smov (!%p505_p2, %s3093_s28), 7 }
  0x2c   : > { %587 = vst.msk [vmem:[#allocation2 + $0xa0] sm:$0xff] %vm566_vm0, %v2999_v0  ;;  %588 = vst.msk [vmem:[#allocation2 + $0xa8] sm:$0xff] %vm566_vm0, %v2999_v0  ;;  %s2558_s21 = sshll.u32 %s3836_s26, 4  ;;  %p513_p3 = scmp.lt.s32.totalorder %s512_s29, 7 }
  0x2d   : > { %589 = vst.msk [vmem:[#allocation2 + $0xb0] sm:$0xff] %vm566_vm0, %v2999_v0  ;;  %590 = vst.msk [vmem:[#allocation2 + $0xb8] sm:$0xff] %vm566_vm0, %v2999_v0  ;;  %s502_s27 = scalar_lea.vmem %s3806_s3, %s2558_s21  ;;  %p523_p4 = scmp.lt.s32.totalorder %s522_s30, 7 }
  0x2e   : > { %591 = vst.msk [vmem:[#allocation2 + $0xc0] sm:$0xff] %vm566_vm0, %v2999_v0  ;;  %592 = vst.msk [vmem:[#allocation2 + $0xc8] sm:$0xff] %vm566_vm0, %v2999_v0  ;;  %s3138_s17 = scalar_lea.vmem %s3821_s2, %s2405_s13  ;;  %s3145_s20 = scalar_lea.vmem %s3822_s9, %s2413_s14 }
  0x2f   : > { %593 = vst.msk [vmem:[#allocation2 + $0xd0] sm:$0xff] %vm566_vm0, %v2999_v0  ;;  %594 = vst.msk [vmem:[#allocation2 + $0xd8] sm:$0xff] %vm566_vm0, %v2999_v0  ;;  %s510_s2 = scalar_lea.vmem %s3807_s4, %s3838_s28  ;;  %s3840_s29 = smov (!%p513_p3, %s512_s29), 7 }
  0x30   : > { %595 = vst.msk [vmem:[#allocation2 + $0xe0] sm:$0xff] %vm566_vm0, %v2999_v0  ;;  %596 = vst.msk [vmem:[#allocation2 + $0xe8] sm:$0xff] %vm566_vm0, %v2999_v0  ;;  %p532_p5 = scmp.lt.s32.totalorder %s530_s11, 7  ;;  %s2559_s14 = sshll.u32 %s3840_s29, 4 }
  0x31   : > { %597 = vst.msk [vmem:[#allocation2 + $0xf0] sm:$0xff] %vm566_vm0, %v2999_v0  ;;  %598 = vst.msk [vmem:[#allocation2 + $0xf8] sm:$0xff] %vm566_vm0, %v2999_v0  ;;  %p543_p6 = scmp.lt.s32.totalorder %s542_s12, 7  ;;  %s520_s9 = scalar_lea.vmem %s3808_s5, %s2559_s14 }
  0x32   : > { %s3164_s22 = scalar_lea.vmem %s3813_s10, %s2405_s13  ;;  %s3842_s30 = smov (!%p523_p4, %s522_s30), 7 }
  0x33   : > { %s3844_s11 = smov (!%p532_p5, %s530_s11), 7  ;;  %s528_s25 = scalar_lea.vmem %s3809_s6, %s3842_s30 }
  0x34   : > { %s3173_s15 = sld [smem:[#allocation5 + %s2987_s1]]  ;;  %s2560_s29 = sshll.u32 %s3844_s11, 5 }
  0x35   : > { %s3178_s14 = scalar_lea.vmem %s3810_s7, %s2560_s29  ;;  %s3846_s12 = smov (!%p543_p6, %s542_s12), 7 }
  0x36   : > { %s545_s19 = scalar_lea.vmem %s3811_s8, %s3846_s12 }
  0x3a   : > { %p561_p7 = scmp.gt.s32.totalorder %s3173_s15, 0  ;;  %p2416_p8 = scmp.le.s32.totalorder %s3173_s15, 0 }
  0x3c   : > { %601 = sbr.rel (%p2416_p8) target bundleno = 635 (0x27b), region = 60 }
  0x43   : > { %v2793_v1 = vld [vmem:[%s502_s27] sm:$0xff]   ;;  %v2794_v2 = vld [vmem:[%s502_s27 + $0x8] sm:$0xff]   ;;  %v2798_v6 = vld [vmem:[%s3138_s17 + $0x50] sm:$0xff]   ;;  %vm1467_vm1 = vcmask 523264  }
  0x44   : > { %2761 = vmatprep.subr.bf16.mxu1 %v2793_v1  ;;  %v2795_v3 = vld [vmem:[%s3138_s17 + $0x40] sm:$0xff]   ;;  %2649 = vmatprep.subr.bf16.mxu0 %v2793_v1  ;;  %v2796_v5 = vld [vmem:[%s3138_s17 + $0x48] sm:$0xff]   ;;  %v2799_v8 = vld [vmem:[%s3138_s17 + $0x58] sm:$0xff]  }
  0x45   : > { %2763 = vmatpush3.bf16.msra.mxu1 %v2793_v1  ;;  %2650 = vmatpush3.bf16.msra.mxu0 %v2793_v1  ;;  %v2797_v4 = vld [vmem:[%s520_s9] sm:$0xff]   ;;  %v2802_v7 = vld [vmem:[%s520_s9 + $0x8] sm:$0xff]   ;;  %v2807_v11 = vld [vmem:[%s3138_s17 + $0x10] sm:$0xff]  }
  0x46   : > { %2762 = vmatprep.subr.bf16.mxu1 %v2794_v2  ;;  %2669 = vmatprep.mubr.msk.bf16.mxu1 %vm566_vm0, %v2795_v3  ;;  %v2805_v9 = vld [vmem:[%s3138_s17] sm:$0xff]   ;;  %v2806_v10 = vld [vmem:[%s3138_s17 + $0x8] sm:$0xff]   ;;  %v2808_v13 = vld [vmem:[%s3138_s17 + $0x18] sm:$0xff]  }
  0x47   : > { %2651 = vmatprep.subr.bf16.mxu0 %v2794_v2  ;;  %2653 = vmatprep.mubr.msk.bf16.mxu0 %vm566_vm0, %v2805_v9  ;;  %v2800_v12 = vld [vmem:[%s3138_s17 + $0x60] sm:$0xff]   ;;  %v2801_v14 = vld [vmem:[%s3138_s17 + $0x68] sm:$0xff]   ;;  %v2803_v16 = vld [vmem:[%s3138_s17 + $0x70] sm:$0xff]  }
  0x48   : > { %v2809_v15 = vld [vmem:[%s3138_s17 + $0x20] sm:$0xff]   ;;  %v2810_v17 = vld [vmem:[%s3138_s17 + $0x28] sm:$0xff]   ;;  %v2804_v18 = vld [vmem:[%s3138_s17 + $0x78] sm:$0xff]  }
  0x49   : > { %2764 = vmatpush3.bf16.msra.mxu1 %v2794_v2  ;;  %2652 = vmatpush3.bf16.msra.mxu0 %v2794_v2  ;;  %v2811_v19 = vld [vmem:[%s3138_s17 + $0x30] sm:$0xff]   ;;  %v2812_v20 = vld [vmem:[%s3138_s17 + $0x38] sm:$0xff]   ;;  %v2813_v21 = vld [vmem:[%s3178_s14] sm:$0xff]  }
  0x4a   : > { %2685 = vmatprep.subr.bf16.mxu1 %v2797_v4  ;;  %2721 = vmatprep.subr.bf16.mxu0 %v2813_v21  ;;  %v2814_v22 = vld [vmem:[%s3178_s14 + $0x8] sm:$0xff]   ;;  %v2815_v23 = vld [vmem:[%s3178_s14 + $0x10] sm:$0xff]   ;;  %v2816_v24 = vld [vmem:[%s3178_s14 + $0x18] sm:$0xff]  }
  0x4b   : > { %v3303_v54 = vld [vmem:[%s528_s25] ss:$0 sm:$0xff] }
  0x4c   : > { %2670 = vmatmul.mubr.msk.bf16.vlgmr.msra.gmra.mrb[0].mxu1 %vm566_vm0, %v2796_v5  ;;  %2654 = vmatmul.mubr.msk.bf16.vlgmr.msra.gmra.mrb[0].mxu0 %vm566_vm0, %v2806_v10 }
  0x4d   : > { %2686 = vmatpush3.bf16.msra.mxu1 %v2797_v4  ;;  %2673 = vmatprep.mubr.msk.bf16.mxu1 %vm566_vm0, %v2798_v6 }
  0x4e   : > { %2687 = vmatprep.subr.bf16.mxu1 %v2802_v7  ;;  %2657 = vmatprep.mubr.msk.bf16.mxu0 %vm566_vm0, %v2807_v11 }
  0x4f   : > { %2722 = vmatpush3.bf16.msra.mxu0 %v2813_v21 }
  0x50   : > { %2723 = vmatprep.subr.bf16.mxu0 %v2814_v22 }
  0x51   : > { %2688 = vmatpush3.bf16.msra.mxu1 %v2802_v7 }
  0x53   : > { %2724 = vmatpush3.bf16.msra.mxu0 %v2814_v22 }
  0x54   : > { %2674 = vmatmul.mubr.msk.bf16.gmra.mrb[4].mxu1 %vm566_vm0, %v2799_v8  ;;  %2658 = vmatmul.mubr.msk.bf16.gmra.mrb[4].mxu0 %vm566_vm0, %v2808_v13 }
  0x55   : > { %2677 = vmatprep.mubr.msk.bf16.mxu1 %vm566_vm0, %v2800_v12  ;;  %2661 = vmatprep.mubr.msk.bf16.mxu0 %vm566_vm0, %v2809_v15 }
  0x56   : > { %2725 = vmatprep.subr.bf16.mxu0 %v2815_v23 }
  0x57   : > { %2726 = vmatpush3.bf16.msra.mxu0 %v2815_v23 }
  0x58   : > { %2727 = vmatprep.subr.bf16.mxu0 %v2816_v24 }
  0x5b   : > { %2728 = vmatpush3.bf16.msra.mxu0 %v2816_v24 }
  0x5c   : > { %2678 = vmatmul.mubr.msk.bf16.gmra.mrb[8].mxu1 %vm566_vm0, %v2801_v14  ;;  %2662 = vmatmul.mubr.msk.bf16.gmra.mrb[8].mxu0 %vm566_vm0, %v2810_v17 }
  0x5d   : > { %2681 = vmatprep.mubr.msk.bf16.mxu1 %vm566_vm0, %v2803_v16  ;;  %2665 = vmatprep.mubr.msk.bf16.mxu0 %vm566_vm0, %v2811_v19 }
  0x64   : > { %2682 = vmatmul.mubr.msk.bf16.gmra.mrb[12].mxu1 %vm566_vm0, %v2804_v18  ;;  %2666 = vmatmul.mubr.msk.bf16.gmra.mrb[12].mxu0 %vm566_vm0, %v2812_v20 }
  0x65   : > { %2689 = vmatprep.mubr.msk.bf16.mxu1 %vm566_vm0, %v2805_v9 }
  0x6c   : > { %2690 = vmatmul.mubr.msk.bf16.vlgmr.msra.gmra.mrb[16].mxu1 %vm566_vm0, %v2806_v10 }
  0x6d   : > { %2693 = vmatprep.mubr.msk.bf16.mxu1 %vm566_vm0, %v2807_v11 }
  0x74   : > { %2694 = vmatmul.mubr.msk.bf16.gmra.mrb[20].mxu1 %vm566_vm0, %v2808_v13 }
  0x75   : > { %2697 = vmatprep.mubr.msk.bf16.mxu1 %vm566_vm0, %v2809_v15 }
  0x7c   : > { %2698 = vmatmul.mubr.msk.bf16.gmra.mrb[24].mxu1 %vm566_vm0, %v2810_v17 }
  0x7d   : > { %2701 = vmatprep.mubr.msk.bf16.mxu1 %vm566_vm0, %v2811_v19 }
  0x84   : > { %2702 = vmatmul.mubr.msk.bf16.gmra.mrb[28].mxu1 %vm566_vm0, %v2812_v20 }
  0x85   : > { %2705 = vmatprep.mubr.msk.bf16.mxu1 %vm566_vm0, %v2795_v3 }
  0x8c   : > { %2706 = vmatmul.mubr.msk.bf16.gmra.mrb[32].mxu1 %vm566_vm0, %v2796_v5 }
  0x8d   : > { %2709 = vmatprep.mubr.msk.bf16.mxu1 %vm566_vm0, %v2798_v6 }
  0x94   : > { %2710 = vmatmul.mubr.msk.bf16.gmra.mrb[36].mxu1 %vm566_vm0, %v2799_v8 }
  0x95   : > { %2713 = vmatprep.mubr.msk.bf16.mxu1 %vm566_vm0, %v2800_v12 }
  0x9c   : > { %2714 = vmatmul.mubr.msk.bf16.gmra.mrb[40].mxu1 %vm566_vm0, %v2801_v14 }
  0x9d   : > { %2717 = vmatprep.mubr.msk.bf16.mxu1 %vm566_vm0, %v2803_v16 }
  0xa4   : > { %2718 = vmatmul.mubr.msk.bf16.gmra.mrb[44].mxu1 %vm566_vm0, %v2804_v18 }
 0x11f   : > { %v3240_v25 = vpop.f32.mrb[0].mxu1  ;;  %v3248_v29 = vpop.f32.mrb[0].mxu0 }
 0x120   : > { %v3242_v26 = vpop.f32.mrb[1].mxu1  ;;  %v3250_v30 = vpop.f32.mrb[1].mxu0 }
 0x121   : > { %v3244_v27 = vpop.f32.mrb[2].mxu1  ;;  %v3252_v31 = vpop.f32.mrb[2].mxu0 }
 0x122   : > { %v3246_v28 = vpop.f32.mrb[3].mxu1  ;;  %v3256_v33 = vpop.f32.mrb[3].mxu0 }
 0x127   : > { %v3254_v32 = vpop.f32.mrb[4].mxu1  ;;  %v3264_v37 = vpop.f32.mrb[4].mxu0 }
 0x128   : > { %v3258_v34 = vpop.f32.mrb[5].mxu1  ;;  %v3266_v38 = vpop.f32.mrb[5].mxu0 }
 0x129   : > { %v3260_v35 = vpop.f32.mrb[6].mxu1  ;;  %v3268_v39 = vpop.f32.mrb[6].mxu0 }
 0x12a   : > { %v3262_v36 = vpop.f32.mrb[7].mxu1  ;;  %v3272_v41 = vpop.f32.mrb[7].mxu0 }
 0x12f   : > { %v3270_v40 = vpop.f32.mrb[8].mxu1  ;;  %v3280_v45 = vpop.f32.mrb[8].mxu0 }
 0x130   : > { %v3274_v42 = vpop.f32.mrb[9].mxu1  ;;  %v3282_v46 = vpop.f32.mrb[9].mxu0 }
 0x131   : > { %v3276_v43 = vpop.f32.mrb[10].mxu1  ;;  %v3284_v47 = vpop.f32.mrb[10].mxu0 }
 0x132   : > { %v3278_v44 = vpop.f32.mrb[11].mxu1  ;;  %v3288_v49 = vpop.f32.mrb[11].mxu0 }
 0x137   : > { %v3286_v48 = vpop.f32.mrb[12].mxu1  ;;  %v3296_v53 = vpop.f32.mrb[12].mxu0 }
 0x138   : > { %v3290_v50 = vpop.f32.mrb[13].mxu1  ;;  %v3305_v55 = vpop.f32.mrb[13].mxu0 }
 0x139   : > { %v3292_v51 = vpop.f32.mrb[14].mxu1  ;;  %v3307_v56 = vpop.f32.mrb[14].mxu0 }
 0x13a   : > { %3823 = vst [vmem:[#allocation9_spill] sm:$0xff] %v3292_v51  ;;  %v3294_v52 = vpop.f32.mrb[15].mxu1  ;;  %v3309_v58 = vpop.f32.mrb[15].mxu0 }
 0x13b   : > { %3824 = vst [vmem:[#allocation10_spill] sm:$0xff] %v3294_v52 }
 0x13f   : > { %v2691_v57 = vpop.f32.mrb[16].mxu1 }
 0x140   : > { %v3312_v59 = vadd.f32 %v2691_v57, %v3303_v54  ;;  %v1004_v60 = vpop.f32.mrb[17].mxu1 }
 0x141   : > { %v3315_v61 = vadd.f32 %v3303_v54, %v1004_v60  ;;  %v2692_v62 = vpop.f32.mrb[18].mxu1 }
 0x142   : > { %v2473_v63 = vmul.f32 -1.442695, %v3312_v59  ;;  %v3319_v0 = vadd.f32 %v2692_v62, %v3303_v54  ;;  %v1007_v1 = vpop.f32.mrb[19].mxu1 }
 0x143   : > { %v2471_v2 = vmul.f32 -1.442695, %v3315_v61  ;;  %v3323_v3 = vadd.f32 %v3303_v54, %v1007_v1 }
 0x144   : > { %2817 = vpow2.f32 %v2473_v63  ;;  %v2474_v4 = vmul.f32 -1.442695, %v3319_v0 }
 0x145   : > { %2819 = vpow2.f32 %v2471_v2  ;;  %v2472_v5 = vmul.f32 -1.442695, %v3323_v3 }
 0x146   : > { %2821 = vpow2.f32 %v2474_v4 }
 0x147   : > { %2823 = vpow2.f32 %v2472_v5  ;;  %v2695_v6 = vpop.f32.mrb[20].mxu1 }
 0x148   : > { %v3328_v7 = vadd.f32 %v2695_v6, %v3303_v54  ;;  %v1020_v8 = vpop.f32.mrb[21].mxu1 }
 0x149   : > { %v3331_v9 = vadd.f32 %v3303_v54, %v1020_v8  ;;  %v2696_v10 = vpop.f32.mrb[22].mxu1 }
 0x14a   : > { %v2477_v11 = vmul.f32 -1.442695, %v3328_v7  ;;  %v3335_v12 = vadd.f32 %v2696_v10, %v3303_v54  ;;  %v1023_v13 = vpop.f32.mrb[23].mxu1 }
 0x14b   : > { %v2475_v14 = vmul.f32 -1.442695, %v3331_v9  ;;  %v3339_v15 = vadd.f32 %v3303_v54, %v1023_v13 }
 0x14c   : > { %2825 = vpow2.f32 %v2477_v11  ;;  %v2478_v16 = vmul.f32 -1.442695, %v3335_v12 }
 0x14d   : > { %2827 = vpow2.f32 %v2475_v14  ;;  %v2476_v17 = vmul.f32 -1.442695, %v3339_v15 }
 0x14e   : > { %v2818_v18 = vpop.eup %2817  ;;  %2829 = vpow2.f32 %v2478_v16 }
 0x14f   : > { %v2820_v19 = vpop.eup %2819  ;;  %v1229_v20 = vadd.f32 1.0, %v2818_v18  ;;  %2831 = vpow2.f32 %v2476_v17  ;;  %v2699_v21 = vpop.f32.mrb[24].mxu1 }
 0x150   : > { %v2822_v22 = vpop.eup %2821  ;;  %v1227_v23 = vadd.f32 1.0, %v2820_v19  ;;  %v3344_v24 = vadd.f32 %v2699_v21, %v3303_v54  ;;  %v1036_v57 = vpop.f32.mrb[25].mxu1 }
 0x151   : > { %v2824_v60 = vpop.eup %2823  ;;  %2833 = vrcp.f32 %v1229_v20  ;;  %v1230_v62 = vadd.f32 1.0, %v2822_v22  ;;  %v3347_v63 = vadd.f32 %v3303_v54, %v1036_v57  ;;  %v2700_v1 = vpop.f32.mrb[26].mxu1  ;;  %v3364_v20 = vld [vmem:[%s510_s2] ss:$0 sm:$0xff] }
 0x152   : > { %2835 = vrcp.f32 %v1227_v23  ;;  %v1228_v2 = vadd.f32 1.0, %v2824_v60  ;;  %v2481_v4 = vmul.f32 -1.442695, %v3344_v24  ;;  %v3351_v5 = vadd.f32 %v2700_v1, %v3303_v54  ;;  %v1039_v6 = vpop.f32.mrb[27].mxu1 }
 0x153   : > { %2837 = vrcp.f32 %v1230_v62  ;;  %v2479_v8 = vmul.f32 -1.442695, %v3347_v63  ;;  %v3355_v10 = vadd.f32 %v3303_v54, %v1039_v6  ;;  %v829_v1 = vadd.f32 %v3248_v29, %v3364_v20 }
 0x154   : > { %2839 = vrcp.f32 %v1228_v2  ;;  %v2482_v11 = vmul.f32 -1.442695, %v3351_v5 }
 0x155   : > { %2841 = vpow2.f32 %v2481_v4  ;;  %v2480_v13 = vmul.f32 -1.442695, %v3355_v10 }
 0x156   : > { %v2826_v14 = vpop.eup %2825  ;;  %2843 = vpow2.f32 %v2479_v8 }
 0x157   : > { %v2828_v16 = vpop.eup %2827  ;;  %v1233_v17 = vadd.f32 1.0, %v2826_v14  ;;  %2845 = vpow2.f32 %v2482_v11  ;;  %v2703_v18 = vpop.f32.mrb[28].mxu1 }
 0x158   : > { %v2830_v19 = vpop.eup %2829  ;;  %v1231_v21 = vadd.f32 1.0, %v2828_v16  ;;  %2847 = vpow2.f32 %v2480_v13  ;;  %v3367_v22 = vadd.f32 %v2703_v18, %v3303_v54  ;;  %v1052_v23 = vpop.f32.mrb[29].mxu1  ;;  %v821_v16 = vadd.f32 %v3364_v20, %v3250_v30 }
 0x159   : > { %v2832_v57 = vpop.eup %2831  ;;  %2849 = vrcp.f32 %v1233_v17  ;;  %v1234_v60 = vadd.f32 1.0, %v2830_v19  ;;  %v3370_v62 = vadd.f32 %v3303_v54, %v1052_v23  ;;  %v2704_v2 = vpop.f32.mrb[30].mxu1  ;;  %v824_v30 = vadd.f32 %v3364_v20, %v3256_v33 }
 0x15a   : > { %2851 = vrcp.f32 %v1231_v21  ;;  %v1232_v4 = vadd.f32 1.0, %v2832_v57  ;;  %v2485_v6 = vmul.f32 -1.442695, %v3367_v22  ;;  %v3376_v8 = vadd.f32 %v2704_v2, %v3303_v54  ;;  %v1055_v11 = vpop.f32.mrb[31].mxu1 }
 0x15b   : > { %v2834_v13 = vpop.eup %2833  ;;  %2853 = vrcp.f32 %v1234_v60  ;;  %v2483_v14 = vmul.f32 -1.442695, %v3370_v62  ;;  %v3382_v17 = vadd.f32 %v3303_v54, %v1055_v11  ;;  %v832_v21 = vadd.f32 %v3252_v31, %v3364_v20 }
 0x15c   : > { %v2836_v29 = vpop.eup %2835  ;;  %v1325_v18 = vmul.f32 %v2834_v13, %v3312_v59  ;;  %2855 = vrcp.f32 %v1232_v4  ;;  %v2486_v19 = vmul.f32 -1.442695, %v3376_v8  ;;  %v845_v4 = vadd.f32 %v3264_v37, %v3364_v20 }
 0x15d   : > { %v2838_v23 = vpop.eup %2837  ;;  %v1323_v57 = vmul.f32 %v2836_v29, %v3315_v61  ;;  %2857 = vpow2.f32 %v2485_v6  ;;  %v2484_v60 = vmul.f32 -1.442695, %v3382_v17  ;;  %v837_v6 = vadd.f32 %v3364_v20, %v3266_v38 }
 0x15e   : > { %v2840_v2 = vpop.eup %2839  ;;  %v1326_v11 = vmul.f32 %v2838_v23, %v3319_v0  ;;  %2859 = vpow2.f32 %v2483_v14  ;;  %v1357_v59 = vmul.f32 %v1325_v18, %v829_v1 }
 0x15f   : > { %v2842_v13 = vpop.eup %2841  ;;  %v1324_v31 = vmul.f32 %v2840_v2, %v3323_v3  ;;  %2861 = vpow2.f32 %v2486_v19  ;;  %v1355_v52 = vmul.f32 %v1323_v57, %v821_v16  ;;  %v2707_v61 = vpop.f32.mrb[32].mxu1  ;;  %v848_v16 = vadd.f32 %v3268_v39, %v3364_v20 }
 0x160   : > { %v2844_v29 = vpop.eup %2843  ;;  %v1237_v51 = vadd.f32 1.0, %v2842_v13  ;;  %2863 = vpow2.f32 %v2484_v60  ;;  %v1358_v33 = vmul.f32 %v1326_v11, %v832_v21  ;;  %v3399_v0 = vadd.f32 %v2707_v61, %v3303_v54  ;;  %v1068_v1 = vpop.f32.mrb[33].mxu1 }
 0x161   : > { %v2846_v14 = vpop.eup %2845  ;;  %v1235_v18 = vadd.f32 1.0, %v2844_v29  ;;  %v1356_v37 = vmul.f32 %v1324_v31, %v824_v30  ;;  %v3402_v23 = vadd.f32 %v3303_v54, %v1068_v1  ;;  %v2708_v3 = vpop.f32.mrb[34].mxu1 }
 0x162   : > { %v2848_v19 = vpop.eup %2847  ;;  %2865 = vrcp.f32 %v1237_v51  ;;  %v1238_v38 = vadd.f32 1.0, %v2846_v14  ;;  %v1388_v57 = vpack.c.bf16 %v1358_v33, %v1357_v59  ;;  %v2489_v21 = vmul.f32 -1.442695, %v3399_v0  ;;  %v1071_v60 = vpop.f32.mrb[35].mxu1 }
 0x163   : > { %v2850_v2 = vpop.eup %2849  ;;  %2867 = vrcp.f32 %v1235_v18  ;;  %v1236_v11 = vadd.f32 1.0, %v2848_v19  ;;  %v1387_v13 = vpack.c.bf16 %v1356_v37, %v1355_v52  ;;  %v2487_v30 = vmul.f32 -1.442695, %v3402_v23 }
 0x164   : > { %v2852_v31 = vpop.eup %2851  ;;  %v1329_v61 = vmul.f32 %v2850_v2, %v3328_v7  ;;  %2869 = vrcp.f32 %v1238_v38  ;;  %v3410_v29 = vadd.f32 %v2708_v3, %v3303_v54  ;;  %v3413_v39 = vadd.f32 %v3303_v54, %v1071_v60 }
 0x165   : > { %v2854_v51 = vpop.eup %2853  ;;  %v1327_v59 = vmul.f32 %v2852_v31, %v3331_v9  ;;  %2871 = vrcp.f32 %v1236_v11  ;;  %v840_v33 = vadd.f32 %v3364_v20, %v3272_v41  ;;  %2729 = vmatprep.mubr.msk.bf16.mxu0 %vm1467_vm1, %v1387_v13  ;;  %v861_v52 = vadd.f32 %v3280_v45, %v3364_v20 }
 0x166   : > { %v2856_v7 = vpop.eup %2855  ;;  %v1330_v1 = vmul.f32 %v2854_v51, %v3335_v12  ;;  %2873 = vpow2.f32 %v2489_v21  ;;  %v1361_v14 = vmul.f32 %v1329_v61, %v845_v4  ;;  %v2490_v18 = vmul.f32 -1.442695, %v3410_v29  ;;  %2730 = vmatmul.mubr.msk.bf16.vlgmr.msra.gmra.mrb[16].mxu0 %vm1467_vm1, %v1388_v57 }
 0x167   : > { %v2858_v37 = vpop.eup %2857  ;;  %v1328_v9 = vmul.f32 %v2856_v7, %v3339_v15  ;;  %2875 = vpow2.f32 %v2487_v30  ;;  %v1359_v3 = vmul.f32 %v1327_v59, %v837_v6  ;;  %v2488_v41 = vmul.f32 -1.442695, %v3413_v39  ;;  %v2711_v19 = vpop.f32.mrb[36].mxu1 }
 0x168   : > { %v2860_v38 = vpop.eup %2859  ;;  %v1241_v60 = vadd.f32 1.0, %v2858_v37  ;;  %2877 = vpow2.f32 %v2490_v18  ;;  %v1362_v45 = vmul.f32 %v1330_v1, %v848_v16  ;;  %v3427_v12 = vadd.f32 %v2711_v19, %v3303_v54  ;;  %v1084_v4 = vpop.f32.mrb[37].mxu1 }
 0x169   : > { %v2862_v21 = vpop.eup %2861  ;;  %v1239_v2 = vadd.f32 1.0, %v2860_v38  ;;  %2879 = vpow2.f32 %v2488_v41  ;;  %v1360_v57 = vmul.f32 %v1328_v9, %v840_v33  ;;  %v3430_v11 = vadd.f32 %v3303_v54, %v1084_v4  ;;  %v2712_v15 = vpop.f32.mrb[38].mxu1 }
 0x16a   : > { %v2864_v6 = vpop.eup %2863  ;;  %2881 = vrcp.f32 %v1241_v60  ;;  %v1242_v13 = vadd.f32 1.0, %v2862_v21  ;;  %v1390_v30 = vpack.c.bf16 %v1362_v45, %v1361_v14  ;;  %v2493_v31 = vmul.f32 -1.442695, %v3427_v12  ;;  %v1087_v61 = vpop.f32.mrb[39].mxu1 }
 0x16b   : > { %2883 = vrcp.f32 %v1239_v2  ;;  %v1240_v16 = vadd.f32 1.0, %v2864_v6  ;;  %v1389_v51 = vpack.c.bf16 %v1360_v57, %v1359_v3  ;;  %v2491_v59 = vmul.f32 -1.442695, %v3430_v11 }
 0x16c   : > { %v2866_v7 = vpop.eup %2865  ;;  %2885 = vrcp.f32 %v1242_v13  ;;  %v3435_v33 = vadd.f32 %v2712_v15, %v3303_v54  ;;  %v853_v1 = vadd.f32 %v3364_v20, %v3282_v46  ;;  %v3440_v18 = vadd.f32 %v3303_v54, %v1087_v61 }
 0x16d   : > { %v2868_v14 = vpop.eup %2867  ;;  %v1333_v37 = vmul.f32 %v2866_v7, %v3344_v24  ;;  %2887 = vrcp.f32 %v1240_v16  ;;  %v864_v9 = vadd.f32 %v3284_v47, %v3364_v20  ;;  %v856_v3 = vadd.f32 %v3364_v20, %v3288_v49  ;;  %2733 = vmatprep.mubr.msk.bf16.mxu0 %vm1467_vm1, %v1389_v51 }
 0x16e   : > { %v2870_v41 = vpop.eup %2869  ;;  %v1331_v19 = vmul.f32 %v2868_v14, %v3347_v63  ;;  %2889 = vpow2.f32 %v2493_v31  ;;  %v2494_v46 = vmul.f32 -1.442695, %v3435_v33  ;;  %v2492_v38 = vmul.f32 -1.442695, %v3440_v18  ;;  %2734 = vmatmul.mubr.msk.bf16.gmra.mrb[20].mxu0 %vm1467_vm1, %v1390_v30 }
 0x16f   : > { %v2872_v24 = vpop.eup %2871  ;;  %v1334_v60 = vmul.f32 %v2870_v41, %v3351_v5  ;;  %2891 = vpow2.f32 %v2491_v59  ;;  %v1365_v47 = vmul.f32 %v1333_v37, %v861_v52  ;;  %v2715_v45 = vpop.f32.mrb[40].mxu1  ;;  %v877_v49 = vadd.f32 %v3296_v53, %v3364_v20 }
 0x170   : > { %v2874_v4 = vpop.eup %2873  ;;  %v1332_v21 = vmul.f32 %v2872_v24, %v3355_v10  ;;  %2893 = vpow2.f32 %v2494_v46  ;;  %v1363_v63 = vmul.f32 %v1331_v19, %v853_v1  ;;  %v3457_v2 = vadd.f32 %v2715_v45, %v3303_v54  ;;  %v1100_v57 = vpop.f32.mrb[41].mxu1 }
 0x171   : > { %v2876_v15 = vpop.eup %2875  ;;  %v1245_v6 = vadd.f32 1.0, %v2874_v4  ;;  %2895 = vpow2.f32 %v2492_v38  ;;  %v1366_v13 = vmul.f32 %v1334_v60, %v864_v9  ;;  %v3460_v5 = vadd.f32 %v3303_v54, %v1100_v57  ;;  %v2716_v52 = vpop.f32.mrb[42].mxu1 }
 0x172   : > { %v2878_v30 = vpop.eup %2877  ;;  %v1243_v31 = vadd.f32 1.0, %v2876_v15  ;;  %v1364_v53 = vmul.f32 %v1332_v21, %v856_v3  ;;  %v3463_v61 = vadd.f32 %v2716_v52, %v3303_v54  ;;  %v869_v10 = vadd.f32 %v3364_v20, %v3305_v55  ;;  %v1103_v16 = vpop.f32.mrb[43].mxu1 }
 0x173   : > { %v2880_v51 = vpop.eup %2879  ;;  %2897 = vrcp.f32 %v1245_v6  ;;  %v1246_v59 = vadd.f32 1.0, %v2878_v30  ;;  %v1392_v7 = vpack.c.bf16 %v1366_v13, %v1365_v47  ;;  %v2497_v1 = vmul.f32 -1.442695, %v3457_v2 }
 0x174   : > { %v2882_v14 = vpop.eup %2881  ;;  %2899 = vrcp.f32 %v1243_v31  ;;  %v1244_v37 = vadd.f32 1.0, %v2880_v51  ;;  %v1391_v9 = vpack.c.bf16 %v1364_v53, %v1363_v63  ;;  %v2495_v41 = vmul.f32 -1.442695, %v3460_v5 }
 0x175   : > { %v2884_v3 = vpop.eup %2883  ;;  %v1337_v19 = vmul.f32 %v2882_v14, %v3367_v22  ;;  %2901 = vrcp.f32 %v1246_v59  ;;  %v2498_v46 = vmul.f32 -1.442695, %v3463_v61  ;;  %v3472_v55 = vadd.f32 %v3303_v54, %v1103_v16 }
 0x176   : > { %v2886_v38 = vpop.eup %2885  ;;  %v1335_v24 = vmul.f32 %v2884_v3, %v3370_v62  ;;  %2903 = vrcp.f32 %v1244_v37  ;;  %v880_v60 = vadd.f32 %v3307_v56, %v3364_v20  ;;  %v872_v47 = vadd.f32 %v3364_v20, %v3309_v58  ;;  %2737 = vmatprep.mubr.msk.bf16.mxu0 %vm1467_vm1, %v1391_v9 }
 0x177   : > { %v2888_v45 = vpop.eup %2887  ;;  %v1338_v22 = vmul.f32 %v2886_v38, %v3376_v8  ;;  %2905 = vpow2.f32 %v2497_v1  ;;  %v1369_v4 = vmul.f32 %v1337_v19, %v877_v49  ;;  %v2496_v21 = vmul.f32 -1.442695, %v3472_v55  ;;  %2738 = vmatmul.mubr.msk.bf16.gmra.mrb[24].mxu0 %vm1467_vm1, %v1392_v7  ;;  %v2719_v63 = vpop.f32.mrb[44].mxu1 }
 0x178   : > { %v2890_v62 = vpop.eup %2889  ;;  %v1336_v57 = vmul.f32 %v2888_v45, %v3382_v17  ;;  %2907 = vpow2.f32 %v2495_v41  ;;  %v1367_v56 = vmul.f32 %v1335_v24, %v869_v10  ;;  %v3485_v15 = vadd.f32 %v2719_v63, %v3303_v54  ;;  %v1116_v58 = vpop.f32.mrb[45].mxu1 }
 0x179   : > { %v2892_v6 = vpop.eup %2891  ;;  %v1249_v13 = vadd.f32 1.0, %v2890_v62  ;;  %2909 = vpow2.f32 %v2498_v46  ;;  %v1370_v8 = vmul.f32 %v1338_v22, %v880_v60  ;;  %v3488_v49 = vadd.f32 %v3303_v54, %v1116_v58  ;;  %v2720_v52 = vpop.f32.mrb[46].mxu1 }
 0x17a   : > { %v2894_v30 = vpop.eup %2893  ;;  %v1247_v31 = vadd.f32 1.0, %v2892_v6  ;;  %2911 = vpow2.f32 %v2496_v21  ;;  %v1368_v53 = vmul.f32 %v1336_v57, %v872_v47  ;;  %v2501_v17 = vmul.f32 -1.442695, %v3485_v15  ;;  %v1119_v16 = vpop.f32.mrb[47].mxu1 }
 0x17b   : > { %v2896_v10 = vpop.eup %2895  ;;  %2913 = vrcp.f32 %v1249_v13  ;;  %v1250_v51 = vadd.f32 1.0, %v2894_v30  ;;  %v1394_v59 = vpack.c.bf16 %v1370_v8, %v1369_v4  ;;  %v2499_v7 = vmul.f32 -1.442695, %v3488_v49 }
 0x17c   : > { %2915 = vrcp.f32 %v1247_v31  ;;  %v1248_v1 = vadd.f32 1.0, %v2896_v10  ;;  %v1393_v14 = vpack.c.bf16 %v1368_v53, %v1367_v56  ;;  %v3493_v37 = vadd.f32 %v2720_v52, %v3303_v54 }
 0x17d   : > { %v2898_v9 = vpop.eup %2897  ;;  %2917 = vrcp.f32 %v1250_v51  ;;  %v3496_v41 = vadd.f32 %v3303_v54, %v1119_v16  ;;  %v893_v19 = vadd.f32 %v3240_v25, %v3364_v20  ;;  %v885_v60 = vadd.f32 %v3364_v20, %v3242_v26 }
 0x17e   : > { %v2900_v3 = vpop.eup %2899  ;;  %v1341_v46 = vmul.f32 %v2898_v9, %v3399_v0  ;;  %2919 = vrcp.f32 %v1248_v1  ;;  %v2502_v38 = vmul.f32 -1.442695, %v3493_v37  ;;  %2741 = vmatprep.mubr.msk.bf16.mxu0 %vm1467_vm1, %v1393_v14  ;;  %v896_v25 = vadd.f32 %v3244_v27, %v3364_v20 }
 0x17f   : > { %v2902_v24 = vpop.eup %2901  ;;  %v1339_v47 = vmul.f32 %v2900_v3, %v3402_v23  ;;  %2921 = vpow2.f32 %v2501_v17  ;;  %v2500_v54 = vmul.f32 -1.442695, %v3496_v41  ;;  %2742 = vmatmul.mubr.msk.bf16.gmra.mrb[28].mxu0 %vm1467_vm1, %v1394_v59  ;;  %v888_v21 = vadd.f32 %v3364_v20, %v3246_v28 }
 0x180   : > { %v2904_v45 = vpop.eup %2903  ;;  %v1373_v0 = vmul.f32 %v1341_v46, %v893_v19  ;;  %v1342_v22 = vmul.f32 %v2902_v24, %v3410_v29  ;;  %2923 = vpow2.f32 %v2499_v7  ;;  %v901_v17 = vadd.f32 %v3364_v20, %v3258_v34 }
 0x181   : > { %v2906_v4 = vpop.eup %2905  ;;  %v1371_v26 = vmul.f32 %v1339_v47, %v885_v60  ;;  %v1340_v23 = vmul.f32 %v2904_v45, %v3413_v39  ;;  %2925 = vpow2.f32 %v2502_v38  ;;  %v909_v39 = vadd.f32 %v3254_v32, %v3364_v20 }
 0x182   : > { %v2908_v63 = vpop.eup %2907  ;;  %v1374_v62 = vmul.f32 %v1342_v22, %v896_v25  ;;  %v1253_v57 = vadd.f32 1.0, %v2906_v4  ;;  %2927 = vpow2.f32 %v2500_v54  ;;  %v912_v51 = vadd.f32 %v3260_v35, %v3364_v20 }
 0x183   : > { %v2910_v56 = vpop.eup %2909  ;;  %v1372_v58 = vmul.f32 %v1340_v23, %v888_v21  ;;  %v1251_v6 = vadd.f32 1.0, %v2908_v63  ;;  %v917_v25 = vadd.f32 %v3364_v20, %v3274_v42  ;;  %v928_v4 = vadd.f32 %v3276_v43, %v3364_v20 }
 0x184   : > { %v2912_v27 = vpop.eup %2911  ;;  %v1396_v13 = vpack.c.bf16 %v1374_v62, %v1373_v0  ;;  %2929 = vrcp.f32 %v1253_v57  ;;  %v1254_v29 = vadd.f32 1.0, %v2910_v56 }
 0x185   : > { %v2914_v8 = vpop.eup %2913  ;;  %v1395_v52 = vpack.c.bf16 %v1372_v58, %v1371_v26  ;;  %2931 = vrcp.f32 %v1251_v6  ;;  %v1252_v30 = vadd.f32 1.0, %v2912_v27  ;;  %v941_v58 = vadd.f32 %v3286_v48, %v3364_v20  ;;  %v3825_v27 = vld [vmem:[#allocation9_spill] sm:$0xff]  ;;  %v3826_v48 = vld [vmem:[#allocation10_spill] sm:$0xff] }
 0x186   : > { %v2916_v28 = vpop.eup %2915  ;;  %v1345_v31 = vmul.f32 %v2914_v8, %v3427_v12  ;;  %2933 = vrcp.f32 %v1254_v29  ;;  %v904_v12 = vadd.f32 %v3364_v20, %v3262_v36  ;;  %v925_v36 = vadd.f32 %v3270_v40, %v3364_v20 }
 0x187   : > { %v2918_v53 = vpop.eup %2917  ;;  %v1343_v16 = vmul.f32 %v2916_v28, %v3430_v11  ;;  %2935 = vrcp.f32 %v1252_v30  ;;  %2745 = vmatprep.mubr.msk.bf16.mxu0 %vm1467_vm1, %v1395_v52 }
 0x188   : > { %v2920_v10 = vpop.eup %2919  ;;  %v1377_v59 = vmul.f32 %v1345_v31, %v909_v39  ;;  %v1346_v7 = vmul.f32 %v2918_v53, %v3435_v33  ;;  %2746 = vmatmul.mubr.msk.bf16.gmra.mrb[32].mxu0 %vm1467_vm1, %v1396_v13  ;;  %v944_v13 = vadd.f32 %v3825_v27, %v3364_v20  ;;  %v1405_v31 = vld [vmem:[#allocation2 + $0x10] sm:$0xff]  ;;  %v1403_v53 = vld [vmem:[#allocation2] sm:$0xff] }
 0x189   : > { %v2922_v32 = vpop.eup %2921  ;;  %v1375_v1 = vmul.f32 %v1343_v16, %v901_v17  ;;  %v1344_v34 = vmul.f32 %v2920_v10, %v3440_v18 }
 0x18a   : > { %v2924_v11 = vpop.eup %2923  ;;  %v1378_v14 = vmul.f32 %v1346_v7, %v912_v51  ;;  %v1257_v9 = vadd.f32 1.0, %v2922_v32  ;;  %v1404_v51 = vld [vmem:[#allocation2 + $0x8] sm:$0xff] }
 0x18b   : > { %v2926_v3 = vpop.eup %2925  ;;  %v1376_v19 = vmul.f32 %v1344_v34, %v904_v12  ;;  %v1255_v46 = vadd.f32 1.0, %v2924_v11  ;;  %v1409_v12 = vld [vmem:[#allocation2 + $0x30] sm:$0xff]  ;;  %v1410_v11 = vld [vmem:[#allocation2 + $0x38] sm:$0xff] }
 0x18c   : > { %v2928_v38 = vpop.eup %2927  ;;  %v1398_v35 = vpack.c.bf16 %v1378_v14, %v1377_v59  ;;  %2937 = vrcp.f32 %v1257_v9  ;;  %v1258_v24 = vadd.f32 1.0, %v2926_v3  ;;  %v1408_v3 = vld [vmem:[#allocation2 + $0x28] sm:$0xff] }
 0x18d   : > { %v1397_v33 = vpack.c.bf16 %v1376_v19, %v1375_v1  ;;  %2939 = vrcp.f32 %v1255_v46  ;;  %v1256_v60 = vadd.f32 1.0, %v2928_v38  ;;  %v1407_v1 = vld [vmem:[#allocation2 + $0x20] sm:$0xff] }
 0x18e   : > { %v2930_v47 = vpop.eup %2929  ;;  %2941 = vrcp.f32 %v1258_v24 }
 0x18f   : > { %v2932_v54 = vpop.eup %2931  ;;  %v1349_v18 = vmul.f32 %v2930_v47, %v3457_v2  ;;  %2943 = vrcp.f32 %v1256_v60  ;;  %2749 = vmatprep.mubr.msk.bf16.mxu0 %vm1467_vm1, %v1397_v33  ;;  %v920_v2 = vadd.f32 %v3364_v20, %v3278_v44  ;;  %v1413_v33 = vld [vmem:[#allocation2 + $0x50] sm:$0xff]  ;;  %v1411_v60 = vld [vmem:[#allocation2 + $0x40] sm:$0xff] }
 0x190   : > { %v2934_v45 = vpop.eup %2933  ;;  %v1347_v0 = vmul.f32 %v2932_v54, %v3460_v5  ;;  %2750 = vmatmul.mubr.msk.bf16.gmra.mrb[36].mxu0 %vm1467_vm1, %v1398_v35  ;;  %v1414_v54 = vld [vmem:[#allocation2 + $0x58] sm:$0xff] }
 0x191   : > { %v2936_v22 = vpop.eup %2935  ;;  %v1381_v21 = vmul.f32 %v1349_v18, %v925_v36  ;;  %v1350_v40 = vmul.f32 %v2934_v45, %v3463_v61  ;;  %v933_v61 = vadd.f32 %v3364_v20, %v3290_v50  ;;  %v1412_v45 = vld [vmem:[#allocation2 + $0x48] sm:$0xff] }
 0x192   : > { %v1379_v26 = vmul.f32 %v1347_v0, %v917_v25  ;;  %v1348_v23 = vmul.f32 %v2936_v22, %v3472_v55 }
 0x193   : > { %v1382_v63 = vmul.f32 %v1350_v40, %v928_v4  ;;  %v1417_v40 = vld [vmem:[#allocation2 + $0x70] sm:$0xff] }
 0x194   : > { %v1380_v62 = vmul.f32 %v1348_v23, %v920_v2  ;;  %v1415_v2 = vld [vmem:[#allocation2 + $0x60] sm:$0xff]  ;;  %v1418_v23 = vld [vmem:[#allocation2 + $0x78] sm:$0xff] }
 0x195   : > { %v1400_v42 = vpack.c.bf16 %v1382_v63, %v1381_v21 }
 0x196   : > { %v2938_v57 = vpop.eup %2937  ;;  %v1399_v5 = vpack.c.bf16 %v1380_v62, %v1379_v26 }
 0x197   : > { %v2940_v56 = vpop.eup %2939  ;;  %v1353_v43 = vmul.f32 %v2938_v57, %v3485_v15  ;;  %v936_v15 = vadd.f32 %v3364_v20, %v3826_v48 }
 0x198   : > { %v2942_v6 = vpop.eup %2941  ;;  %v1351_v44 = vmul.f32 %v2940_v56, %v3488_v49  ;;  %2753 = vmatprep.mubr.msk.bf16.mxu0 %vm1467_vm1, %v1399_v5 }
 0x199   : > { %v2944_v55 = vpop.eup %2943  ;;  %v1385_v29 = vmul.f32 %v1353_v43, %v941_v58  ;;  %v1354_v8 = vmul.f32 %v2942_v6, %v3493_v37  ;;  %2754 = vmatmul.mubr.msk.bf16.gmra.mrb[40].mxu0 %vm1467_vm1, %v1400_v42  ;;  %v1406_v37 = vld [vmem:[#allocation2 + $0x18] sm:$0xff]  ;;  %v1416_v42 = vld [vmem:[#allocation2 + $0x68] sm:$0xff]  ;;  %v1421_v6 = vld [vmem:[#allocation2 + $0x90] sm:$0xff] }
 0x19a   : > { %v1383_v52 = vmul.f32 %v1351_v44, %v933_v61  ;;  %v1352_v30 = vmul.f32 %v2944_v55, %v3496_v41  ;;  %v1419_v61 = vld [vmem:[#allocation2 + $0x80] sm:$0xff]  ;;  %v1422_v55 = vld [vmem:[#allocation2 + $0x98] sm:$0xff] }
 0x19b   : > { %v1386_v50 = vmul.f32 %v1354_v8, %v944_v13 }
 0x19c   : > { %v1384_v28 = vmul.f32 %v1352_v30, %v936_v15 }
 0x19d   : > { %v1402_v49 = vpack.c.bf16 %v1386_v50, %v1385_v29  ;;  %v1420_v29 = vld [vmem:[#allocation2 + $0x88] sm:$0xff]  ;;  %v1425_v50 = vld [vmem:[#allocation2 + $0xb0] sm:$0xff] }
 0x19e   : > { %v1401_v39 = vpack.c.bf16 %v1384_v28, %v1383_v52  ;;  %v1423_v28 = vld [vmem:[#allocation2 + $0xa0] sm:$0xff] }
 0x1a0   : > { %2757 = vmatprep.mubr.msk.bf16.mxu0 %vm1467_vm1, %v1401_v39  ;;  %v1426_v39 = vld [vmem:[#allocation2 + $0xb8] sm:$0xff] }
 0x1a1   : > { %2758 = vmatmul.mubr.msk.bf16.gmra.mrb[44].mxu0 %vm1467_vm1, %v1402_v49 }
 0x239   : > { %v2731_v17 = vpop.f32.mrb[16].mxu0 }
 0x23a   : > { %v1679_v16 = vadd.f32 %v2731_v17, %v1405_v31  ;;  %v1550_v10 = vpop.f32.mrb[17].mxu0  ;;  %v1424_v17 = vld [vmem:[#allocation2 + $0xa8] sm:$0xff] }
 0x23b   : > { %v1677_v59 = vadd.f32 %v1550_v10, %v1403_v53  ;;  %v2732_v20 = vpop.f32.mrb[18].mxu0 }
 0x23c   : > { %1711 = vst.msk [vmem:[#allocation2 + $0x10] sm:$0xff] %vm566_vm0, %v1679_v16  ;;  %v1680_v41 = vadd.f32 %v2732_v20, %v1406_v37  ;;  %v1553_v7 = vpop.f32.mrb[19].mxu0  ;;  %v1429_v20 = vld [vmem:[#allocation2 + $0xd0] sm:$0xff] }
 0x23d   : > { %1709 = vst.msk [vmem:[#allocation2] sm:$0xff] %vm566_vm0, %v1677_v59  ;;  %v1678_v32 = vadd.f32 %v1553_v7, %v1404_v51 }
 0x23e   : > { %1712 = vst.msk [vmem:[#allocation2 + $0x18] sm:$0xff] %vm566_vm0, %v1680_v41  ;;  %v1427_v41 = vld [vmem:[#allocation2 + $0xc0] sm:$0xff] }
 0x23f   : > { %1710 = vst.msk [vmem:[#allocation2 + $0x8] sm:$0xff] %vm566_vm0, %v1678_v32  ;;  %v1430_v32 = vld [vmem:[#allocation2 + $0xd8] sm:$0xff] }
 0x241   : > { %v2735_v34 = vpop.f32.mrb[20].mxu0 }
 0x242   : > { %v1683_v14 = vadd.f32 %v2735_v34, %v1409_v12  ;;  %v1566_v9 = vpop.f32.mrb[21].mxu0  ;;  %v1428_v34 = vld [vmem:[#allocation2 + $0xc8] sm:$0xff] }
 0x243   : > { %v1681_v19 = vadd.f32 %v1566_v9, %v1407_v1  ;;  %v2736_v46 = vpop.f32.mrb[22].mxu0 }
 0x244   : > { %1715 = vst.msk [vmem:[#allocation2 + $0x30] sm:$0xff] %vm566_vm0, %v1683_v14  ;;  %v1684_v38 = vadd.f32 %v2736_v46, %v1410_v11  ;;  %v1569_v35 = vpop.f32.mrb[23].mxu0  ;;  %v1433_v46 = vld [vmem:[#allocation2 + $0xf0] sm:$0xff] }
 0x245   : > { %1713 = vst.msk [vmem:[#allocation2 + $0x20] sm:$0xff] %vm566_vm0, %v1681_v19  ;;  %v1682_v24 = vadd.f32 %v1569_v35, %v1408_v3 }
 0x246   : > { %1716 = vst.msk [vmem:[#allocation2 + $0x38] sm:$0xff] %vm566_vm0, %v1684_v38  ;;  %v1431_v38 = vld [vmem:[#allocation2 + $0xe0] sm:$0xff] }
 0x247   : > { %1714 = vst.msk [vmem:[#allocation2 + $0x28] sm:$0xff] %vm566_vm0, %v1682_v24  ;;  %v1434_v24 = vld [vmem:[#allocation2 + $0xf8] sm:$0xff] }
 0x24a   : > { %v2739_v47 = vpop.f32.mrb[24].mxu0 }
 0x24b   : > { %v1687_v36 = vadd.f32 %v2739_v47, %v1413_v33  ;;  %v1582_v18 = vpop.f32.mrb[25].mxu0  ;;  %v1432_v47 = vld [vmem:[#allocation2 + $0xe8] sm:$0xff] }
 0x24c   : > { %v1685_v25 = vadd.f32 %v1582_v18, %v1411_v60  ;;  %v2740_v0 = vpop.f32.mrb[26].mxu0 }
 0x24d   : > { %1719 = vst.msk [vmem:[#allocation2 + $0x50] sm:$0xff] %vm566_vm0, %v1687_v36  ;;  %v1688_v22 = vadd.f32 %v2740_v0, %v1414_v54  ;;  %v1585_v4 = vpop.f32.mrb[27].mxu0 }
 0x24e   : > { %1717 = vst.msk [vmem:[#allocation2 + $0x40] sm:$0xff] %vm566_vm0, %v1685_v25  ;;  %v1686_v21 = vadd.f32 %v1585_v4, %v1412_v45 }
 0x24f   : > { %1720 = vst.msk [vmem:[#allocation2 + $0x58] sm:$0xff] %vm566_vm0, %v1688_v22 }
 0x250   : > { %1718 = vst.msk [vmem:[#allocation2 + $0x48] sm:$0xff] %vm566_vm0, %v1686_v21 }
 0x252   : > { %v2743_v26 = vpop.f32.mrb[28].mxu0 }
 0x253   : > { %v1691_v63 = vadd.f32 %v2743_v26, %v1417_v40  ;;  %v1598_v62 = vpop.f32.mrb[29].mxu0 }
 0x254   : > { %v1689_v57 = vadd.f32 %v1598_v62, %v1415_v2  ;;  %v2744_v5 = vpop.f32.mrb[30].mxu0 }
 0x255   : > { %1723 = vst.msk [vmem:[#allocation2 + $0x70] sm:$0xff] %vm566_vm0, %v1691_v63  ;;  %v1692_v56 = vadd.f32 %v2744_v5, %v1418_v23  ;;  %v1601_v58 = vpop.f32.mrb[31].mxu0 }
 0x256   : > { %1721 = vst.msk [vmem:[#allocation2 + $0x60] sm:$0xff] %vm566_vm0, %v1689_v57  ;;  %v1690_v43 = vadd.f32 %v1601_v58, %v1416_v42 }
 0x257   : > { %1724 = vst.msk [vmem:[#allocation2 + $0x78] sm:$0xff] %vm566_vm0, %v1692_v56 }
 0x258   : > { %1722 = vst.msk [vmem:[#allocation2 + $0x68] sm:$0xff] %vm566_vm0, %v1690_v43 }
 0x25b   : > { %v2747_v44 = vpop.f32.mrb[32].mxu0 }
 0x25c   : > { %v1695_v27 = vadd.f32 %v2747_v44, %v1421_v6  ;;  %v1614_v13 = vpop.f32.mrb[33].mxu0 }
 0x25d   : > { %v1693_v8 = vadd.f32 %v1614_v13, %v1419_v61  ;;  %v2748_v48 = vpop.f32.mrb[34].mxu0 }
 0x25e   : > { %1727 = vst.msk [vmem:[#allocation2 + $0x90] sm:$0xff] %vm566_vm0, %v1695_v27  ;;  %v1696_v15 = vadd.f32 %v2748_v48, %v1422_v55  ;;  %v1617_v52 = vpop.f32.mrb[35].mxu0 }
 0x25f   : > { %1725 = vst.msk [vmem:[#allocation2 + $0x80] sm:$0xff] %vm566_vm0, %v1693_v8  ;;  %v1694_v30 = vadd.f32 %v1617_v52, %v1420_v29 }
 0x260   : > { %1728 = vst.msk [vmem:[#allocation2 + $0x98] sm:$0xff] %vm566_vm0, %v1696_v15 }
 0x261   : > { %1726 = vst.msk [vmem:[#allocation2 + $0x88] sm:$0xff] %vm566_vm0, %v1694_v30 }
 0x263   : > { %v2751_v49 = vpop.f32.mrb[36].mxu0 }
 0x264   : > { %v1699_v31 = vadd.f32 %v2751_v49, %v1425_v50  ;;  %v1630_v53 = vpop.f32.mrb[37].mxu0 }
 0x265   : > { %v1697_v37 = vadd.f32 %v1630_v53, %v1423_v28  ;;  %v2752_v16 = vpop.f32.mrb[38].mxu0 }
 0x266   : > { %1731 = vst.msk [vmem:[#allocation2 + $0xb0] sm:$0xff] %vm566_vm0, %v1699_v31  ;;  %v1700_v10 = vadd.f32 %v2752_v16, %v1426_v39  ;;  %v1633_v51 = vpop.f32.mrb[39].mxu0 }
 0x267   : > { %1729 = vst.msk [vmem:[#allocation2 + $0xa0] sm:$0xff] %vm566_vm0, %v1697_v37  ;;  %v1698_v59 = vadd.f32 %v1633_v51, %v1424_v17 }
 0x268   : > { %1732 = vst.msk [vmem:[#allocation2 + $0xb8] sm:$0xff] %vm566_vm0, %v1700_v10 }
 0x269   : > { %1730 = vst.msk [vmem:[#allocation2 + $0xa8] sm:$0xff] %vm566_vm0, %v1698_v59 }
 0x26c   : > { %v2755_v7 = vpop.f32.mrb[40].mxu0 }
 0x26d   : > { %v1703_v12 = vadd.f32 %v2755_v7, %v1429_v20  ;;  %v1646_v1 = vpop.f32.mrb[41].mxu0 }
 0x26e   : > { %v1701_v11 = vadd.f32 %v1646_v1, %v1427_v41  ;;  %v2756_v14 = vpop.f32.mrb[42].mxu0 }
 0x26f   : > { %1735 = vst.msk [vmem:[#allocation2 + $0xd0] sm:$0xff] %vm566_vm0, %v1703_v12  ;;  %v1704_v9 = vadd.f32 %v2756_v14, %v1430_v32  ;;  %v1649_v3 = vpop.f32.mrb[43].mxu0 }
 0x270   : > { %1733 = vst.msk [vmem:[#allocation2 + $0xc0] sm:$0xff] %vm566_vm0, %v1701_v11  ;;  %v1702_v19 = vadd.f32 %v1649_v3, %v1428_v34 }
 0x271   : > { %1736 = vst.msk [vmem:[#allocation2 + $0xd8] sm:$0xff] %vm566_vm0, %v1704_v9 }
 0x272   : > { %1734 = vst.msk [vmem:[#allocation2 + $0xc8] sm:$0xff] %vm566_vm0, %v1702_v19 }
 0x274   : > { %v2759_v35 = vpop.f32.mrb[44].mxu0 }
 0x275   : > { %v1707_v33 = vadd.f32 %v2759_v35, %v1433_v46  ;;  %v1662_v60 = vpop.f32.mrb[45].mxu0 }
 0x276   : > { %v1705_v54 = vadd.f32 %v1662_v60, %v1431_v38  ;;  %v2760_v36 = vpop.f32.mrb[46].mxu0 }
 0x277   : > { %1739 = vst.msk [vmem:[#allocation2 + $0xf0] sm:$0xff] %vm566_vm0, %v1707_v33  ;;  %v1708_v18 = vadd.f32 %v2760_v36, %v1434_v24  ;;  %v1665_v45 = vpop.f32.mrb[47].mxu0 }
 0x278   : > { %1737 = vst.msk [vmem:[#allocation2 + $0xe0] sm:$0xff] %vm566_vm0, %v1705_v54  ;;  %v1706_v25 = vadd.f32 %v1665_v45, %v1432_v47 }
 0x279   : > { %1740 = vst.msk [vmem:[#allocation2 + $0xf8] sm:$0xff] %vm566_vm0, %v1708_v18 }
 0x27a   : > { %1738 = vst.msk [vmem:[#allocation2 + $0xe8] sm:$0xff] %vm566_vm0, %v1706_v25 }
 0x27b PF: > { %v1817_v0 = vld [vmem:[%s3145_s20 + $0x10] sm:$0xff]  ;;  %v1815_v22 = vld [vmem:[%s3145_s20] sm:$0xff]  ;;  %v3000_v4 = vmov 0   ;;  %v1818_v21 = vld [vmem:[%s3145_s20 + $0x18] sm:$0xff]  ;;  %s2039_s2 = scalar_select %p561_p7, 1, 0 }
 0x27c   : > { %2946 = vset.pattern.permute.xlu1 %v3000_v4  ;;  %2945 = vset.pattern.permute.xlu0 %v3000_v4  ;;  %v1816_v40 = vld [vmem:[%s3145_s20 + $0x8] sm:$0xff]  ;;  %v1819_v26 = vld [vmem:[%s3145_s20 + $0x20] sm:$0xff]  ;;  %v1822_v23 = vld [vmem:[%s3145_s20 + $0x38] sm:$0xff]  ;;  %vm2202_vm3 = vcmask 257024  }
 0x27d   : > { %1859 = vperm.xlu1 %2946, %v1817_v0   ;;  %1849 = vperm.xlu0 %2945, %v1815_v22   ;;  %v1820_v2 = vld [vmem:[%s3145_s20 + $0x28] sm:$0xff]  ;;  %v1821_v63 = vld [vmem:[%s3145_s20 + $0x30] sm:$0xff]  ;;  %v1823_v42 = vld [vmem:[%s3145_s20 + $0x40] sm:$0xff]  ;;  %v2040_v16 = vstv %s2039_s2 }
 0x27e   : > { %v1824_v62 = vld [vmem:[%s3145_s20 + $0x48] sm:$0xff]  ;;  %v1826_v57 = vld [vmem:[%s3145_s20 + $0x58] sm:$0xff]  ;;  %v1825_v5 = vld [vmem:[%s3145_s20 + $0x50] sm:$0xff]  ;;  %vm3633_vm2 = vcmp.eq.s32.totalorder %v2040_v16, 1 }
 0x27f   : > { %v1828_v56 = vld [vmem:[%s3145_s20 + $0x68] sm:$0xff]  ;;  %v1827_v58 = vld [vmem:[%s3145_s20 + $0x60] sm:$0xff]  ;;  %v1830_v43 = vld [vmem:[%s3145_s20 + $0x78] sm:$0xff] }
 0x280   : > { %v1829_v6 = vld [vmem:[%s3145_s20 + $0x70] sm:$0xff]  ;;  %v1832_v61 = vld [vmem:[%s3145_s20 + $0x88] sm:$0xff]  ;;  %v1831_v44 = vld [vmem:[%s3145_s20 + $0x80] sm:$0xff] }
 0x281   : > { %1864 = vperm.xlu1 %2946, %v1818_v21   ;;  %1854 = vperm.xlu0 %2945, %v1816_v40   ;;  %v1834_v55 = vld [vmem:[%s3145_s20 + $0x98] sm:$0xff]  ;;  %v1833_v27 = vld [vmem:[%s3145_s20 + $0x90] sm:$0xff]  ;;  %v1836_v13 = vld [vmem:[%s3145_s20 + $0xa8] sm:$0xff] }
 0x282   : > { %v1835_v29 = vld [vmem:[%s3145_s20 + $0xa0] sm:$0xff]  ;;  %v1838_v8 = vld [vmem:[%s3145_s20 + $0xb8] sm:$0xff]  ;;  %v1837_v48 = vld [vmem:[%s3145_s20 + $0xb0] sm:$0xff] }
 0x283   : > { %v1840_v15 = vld [vmem:[%s3145_s20 + $0xc8] sm:$0xff]  ;;  %v1839_v52 = vld [vmem:[%s3145_s20 + $0xc0] sm:$0xff]  ;;  %v1842_v30 = vld [vmem:[%s3145_s20 + $0xd8] sm:$0xff] }
 0x284   : > { %v1841_v50 = vld [vmem:[%s3145_s20 + $0xd0] sm:$0xff]  ;;  %v1844_v28 = vld [vmem:[%s3145_s20 + $0xe8] sm:$0xff]  ;;  %v1843_v49 = vld [vmem:[%s3145_s20 + $0xe0] sm:$0xff] }
 0x285   : > { %1874 = vperm.xlu1 %2946, %v1820_v2   ;;  %1869 = vperm.xlu0 %2945, %v1819_v26   ;;  %v1846_v39 = vld [vmem:[%s3145_s20 + $0xf8] sm:$0xff]  ;;  %v1845_v31 = vld [vmem:[%s3145_s20 + $0xf0] sm:$0xff]  ;;  %v3629_v17 = vld [vmem:[%s545_s19] ss:$0 sm:$0xff] }
 0x286   : > { %v1746_v53 = vld [vmem:[#allocation2 + $0x10] sm:$0xff]  ;;  %v1744_v37 = vld [vmem:[#allocation2] sm:$0xff]  ;;  %v1747_v59 = vld [vmem:[#allocation2 + $0x18] sm:$0xff] }
 0x287   : > { %v1785_v10 = vadd.f32 %v3629_v17, %v1746_v53  ;;  %v1783_v51 = vadd.f32 %v3629_v17, %v1744_v37  ;;  %v1745_v20 = vld [vmem:[#allocation2 + $0x8] sm:$0xff]  ;;  %v1786_v34 = vadd.f32 %v3629_v17, %v1747_v59  ;;  %v1748_v9 = vld [vmem:[#allocation2 + $0x20] sm:$0xff]  ;;  %v1751_v36 = vld [vmem:[#allocation2 + $0x38] sm:$0xff] }
 0x288   : > { %v1784_v11 = vadd.f32 %v3629_v17, %v1745_v20  ;;  %v1749_v14 = vld [vmem:[#allocation2 + $0x28] sm:$0xff]  ;;  %v1787_v54 = vadd.f32 %v3629_v17, %v1748_v9  ;;  %v1750_v18 = vld [vmem:[#allocation2 + $0x30] sm:$0xff]  ;;  %v1790_v26 = vadd.f32 %v3629_v17, %v1751_v36  ;;  %v1756_v53 = vld [vmem:[#allocation2 + $0x60] sm:$0xff] }
 0x289   : > { %1884 = vperm.xlu1 %2946, %v1822_v23   ;;  %1879 = vperm.xlu0 %2945, %v1821_v63   ;;  %v1788_v47 = vadd.f32 %v3629_v17, %v1749_v14  ;;  %v1789_v23 = vadd.f32 %v3629_v17, %v1750_v18  ;;  %v1753_v63 = vld [vmem:[#allocation2 + $0x48] sm:$0xff] }
 0x28d   : > { %1894 = vperm.xlu1 %2946, %v1824_v62   ;;  %1889 = vperm.xlu0 %2945, %v1823_v42   ;;  %v1752_v62 = vld [vmem:[#allocation2 + $0x40] sm:$0xff] }
 0x291   : > { %1904 = vperm.xlu1 %2946, %v1826_v57   ;;  %1899 = vperm.xlu0 %2945, %v1825_v5  }
 0x295   : > { %1914 = vperm.xlu1 %2946, %v1828_v56   ;;  %1909 = vperm.xlu0 %2945, %v1827_v58  }
 0x299   : > { %1924 = vperm.xlu1 %2946, %v1830_v43   ;;  %1919 = vperm.xlu0 %2945, %v1829_v6  }
 0x29d   : > { %1934 = vperm.xlu1 %2946, %v1832_v61   ;;  %1929 = vperm.xlu0 %2945, %v1831_v44   ;;  %v1792_v44 = vadd.f32 %v3629_v17, %v1753_v63 }
 0x2a1   : > { %1944 = vperm.xlu1 %2946, %v1834_v55   ;;  %1939 = vperm.xlu0 %2945, %v1833_v27   ;;  %v1791_v55 = vadd.f32 %v3629_v17, %v1752_v62  ;;  %v1755_v27 = vld [vmem:[#allocation2 + $0x58] sm:$0xff] }
 0x2a5   : > { %1954 = vperm.xlu1 %2946, %v1836_v13   ;;  %1949 = vperm.xlu0 %2945, %v1835_v29   ;;  %v1754_v13 = vld [vmem:[#allocation2 + $0x50] sm:$0xff] }
 0x2a9   : > { %1964 = vperm.xlu1 %2946, %v1838_v8   ;;  %1959 = vperm.xlu0 %2945, %v1837_v48  }
 0x2ad   : > { %1974 = vperm.xlu1 %2946, %v1840_v15   ;;  %1969 = vperm.xlu0 %2945, %v1839_v52  }
 0x2b1   : > { %1984 = vperm.xlu1 %2946, %v1842_v30   ;;  %1979 = vperm.xlu0 %2945, %v1841_v50  }
 0x2b5   : > { %1994 = vperm.xlu1 %2946, %v1844_v28   ;;  %1989 = vperm.xlu0 %2945, %v1843_v49   ;;  %v1794_v49 = vadd.f32 %v3629_v17, %v1755_v27 }
 0x2b9   : > { %2004 = vperm.xlu1 %2946, %v1846_v39   ;;  %1999 = vperm.xlu0 %2945, %v1845_v31   ;;  %v1793_v39 = vadd.f32 %v3629_v17, %v1754_v13  ;;  %v1757_v31 = vld [vmem:[#allocation2 + $0x68] sm:$0xff] }
 0x2fc   : > { %v1860_v7 = vpop.permute.xlu1 %1859  ;;  %v1850_v32 = vpop.permute.xlu0 %1849 }
 0x2fd   : > { %v2009_v12 = vmul.f32 %v1860_v7, %v1785_v10  ;;  %v2007_v1 = vmul.f32 %v1850_v32, %v1783_v51 }
 0x2ff   : > { %v2044_v3 = vsel %vm3633_vm2, %v2009_v12, 0.0  ;;  %v2042_v19 = vsel %vm3633_vm2, %v2007_v1, 0.0  ;;  %v1796_v12 = vadd.f32 %v3629_v17, %v1757_v31  ;;  %v1795_v1 = vadd.f32 %v3629_v17, %v1756_v53 }
 0x300   : > { %v2563_v46 = vpack.c.bf16 %v2044_v3, %v2044_v3  ;;  %v2561_v38 = vpack.c.bf16 %v2042_v19, %v2042_v19  ;;  %v1865_v35 = vpop.permute.xlu1 %1864  ;;  %v1855_v24 = vpop.permute.xlu0 %1854 }
 0x301   : > { %v2010_v33 = vmul.f32 %v1865_v35, %v1786_v34  ;;  %v2008_v60 = vmul.f32 %v1855_v24, %v1784_v11  ;;  %v1759_v34 = vld [vmem:[#allocation2 + $0x78] sm:$0xff]  ;;  %v1758_v11 = vld [vmem:[#allocation2 + $0x70] sm:$0xff] }
 0x302   : > { %2205 = vst.msk [vmem:[%s3164_s22 + $0x8] sm:$0xf] %vm2202_vm3, %v2563_v46  ;;  %2203 = vst.msk [vmem:[%s3164_s22] sm:$0xf] %vm2202_vm3, %v2561_v38 }
 0x303   : > { %v2045_v45 = vsel %vm3633_vm2, %v2010_v33, 0.0  ;;  %v2043_v25 = vsel %vm3633_vm2, %v2008_v60, 0.0  ;;  %v1798_v33 = vadd.f32 %v3629_v17, %v1759_v34  ;;  %v1797_v60 = vadd.f32 %v3629_v17, %v1758_v11 }
 0x304   : > { %v2564_v0 = vpack.c.bf16 %v2045_v45, %v2045_v45  ;;  %v2562_v22 = vpack.c.bf16 %v2043_v25, %v2043_v25  ;;  %v1875_v4 = vpop.permute.xlu1 %1874  ;;  %v1870_v21 = vpop.permute.xlu0 %1869 }
 0x305   : > { %v2012_v40 = vmul.f32 %v1875_v4, %v1788_v47  ;;  %v2011_v2 = vmul.f32 %v1870_v21, %v1787_v54  ;;  %v1761_v47 = vld [vmem:[#allocation2 + $0x88] sm:$0xff]  ;;  %v1760_v54 = vld [vmem:[#allocation2 + $0x80] sm:$0xff] }
 0x306   : > { %2206 = vst.msk [vmem:[%s3164_s22 + $0xc] sm:$0xf] %vm2202_vm3, %v2564_v0  ;;  %2204 = vst.msk [vmem:[%s3164_s22 + $0x4] sm:$0xf] %vm2202_vm3, %v2562_v22 }
 0x307   : > { %v2047_v42 = vsel %vm3633_vm2, %v2012_v40, 0.0  ;;  %v2046_v57 = vsel %vm3633_vm2, %v2011_v2, 0.0  ;;  %v1800_v40 = vadd.f32 %v3629_v17, %v1761_v47  ;;  %v1799_v2 = vadd.f32 %v3629_v17, %v1760_v54 }
 0x308   : > { %v2566_v5 = vpack.c.bf16 %v2047_v42, %v2047_v42  ;;  %v2565_v56 = vpack.c.bf16 %v2046_v57, %v2046_v57  ;;  %v1885_v58 = vpop.permute.xlu1 %1884  ;;  %v1880_v43 = vpop.permute.xlu0 %1879 }
 0x309   : > { %v2014_v6 = vmul.f32 %v1885_v58, %v1790_v26  ;;  %v2013_v61 = vmul.f32 %v1880_v43, %v1789_v23  ;;  %v1763_v26 = vld [vmem:[#allocation2 + $0x98] sm:$0xff]  ;;  %v1762_v23 = vld [vmem:[#allocation2 + $0x90] sm:$0xff] }
 0x30a   : > { %2208 = vst.msk [vmem:[%s3164_s22 + $0x14] sm:$0xf] %vm2202_vm3, %v2566_v5  ;;  %2207 = vst.msk [vmem:[%s3164_s22 + $0x10] sm:$0xf] %vm2202_vm3, %v2565_v56 }
 0x30b   : > { %v2049_v29 = vsel %vm3633_vm2, %v2014_v6, 0.0  ;;  %v2048_v8 = vsel %vm3633_vm2, %v2013_v61, 0.0  ;;  %v1802_v6 = vadd.f32 %v3629_v17, %v1763_v26  ;;  %v1801_v61 = vadd.f32 %v3629_v17, %v1762_v23 }
 0x30c   : > { %v2568_v48 = vpack.c.bf16 %v2049_v29, %v2049_v29  ;;  %v2567_v15 = vpack.c.bf16 %v2048_v8, %v2048_v8  ;;  %v1895_v52 = vpop.permute.xlu1 %1894  ;;  %v1890_v30 = vpop.permute.xlu0 %1889 }
 0x30d   : > { %v2016_v50 = vmul.f32 %v1895_v52, %v1792_v44  ;;  %v2015_v28 = vmul.f32 %v1890_v30, %v1791_v55  ;;  %v1765_v44 = vld [vmem:[#allocation2 + $0xa8] sm:$0xff]  ;;  %v1764_v55 = vld [vmem:[#allocation2 + $0xa0] sm:$0xff] }
 0x30e   : > { %2210 = vst.msk [vmem:[%s3164_s22 + $0x1c] sm:$0xf] %vm2202_vm3, %v2568_v48  ;;  %2209 = vst.msk [vmem:[%s3164_s22 + $0x18] sm:$0xf] %vm2202_vm3, %v2567_v15 }
 0x30f   : > { %v2051_v37 = vsel %vm3633_vm2, %v2016_v50, 0.0  ;;  %v2050_v16 = vsel %vm3633_vm2, %v2015_v28, 0.0  ;;  %v1804_v50 = vadd.f32 %v3629_v17, %v1765_v44  ;;  %v1803_v28 = vadd.f32 %v3629_v17, %v1764_v55 }
 0x310   : > { %v2570_v10 = vpack.c.bf16 %v2051_v37, %v2051_v37  ;;  %v2569_v51 = vpack.c.bf16 %v2050_v16, %v2050_v16  ;;  %v1905_v59 = vpop.permute.xlu1 %1904  ;;  %v1900_v20 = vpop.permute.xlu0 %1899 }
 0x311   : > { %v2018_v7 = vmul.f32 %v1905_v59, %v1794_v49  ;;  %v2017_v32 = vmul.f32 %v1900_v20, %v1793_v39  ;;  %v1767_v49 = vld [vmem:[#allocation2 + $0xb8] sm:$0xff]  ;;  %v1766_v39 = vld [vmem:[#allocation2 + $0xb0] sm:$0xff] }
 0x312   : > { %2212 = vst.msk [vmem:[%s3164_s22 + $0x24] sm:$0xf] %vm2202_vm3, %v2570_v10  ;;  %2211 = vst.msk [vmem:[%s3164_s22 + $0x20] sm:$0xf] %vm2202_vm3, %v2569_v51 }
 0x313   : > { %v2053_v14 = vsel %vm3633_vm2, %v2018_v7, 0.0  ;;  %v2052_v9 = vsel %vm3633_vm2, %v2017_v32, 0.0  ;;  %v1806_v7 = vadd.f32 %v3629_v17, %v1767_v49  ;;  %v1805_v32 = vadd.f32 %v3629_v17, %v1766_v39 }
 0x314   : > { %v2572_v3 = vpack.c.bf16 %v2053_v14, %v2053_v14  ;;  %v2571_v19 = vpack.c.bf16 %v2052_v9, %v2052_v9  ;;  %v1915_v46 = vpop.permute.xlu1 %1914  ;;  %v1910_v38 = vpop.permute.xlu0 %1909 }
 0x315   : > { %v2020_v35 = vmul.f32 %v1915_v46, %v1796_v12  ;;  %v2019_v24 = vmul.f32 %v1910_v38, %v1795_v1  ;;  %v1769_v12 = vld [vmem:[#allocation2 + $0xc8] sm:$0xff]  ;;  %v1768_v1 = vld [vmem:[#allocation2 + $0xc0] sm:$0xff] }
 0x316   : > { %2214 = vst.msk [vmem:[%s3164_s22 + $0x2c] sm:$0xf] %vm2202_vm3, %v2572_v3  ;;  %2213 = vst.msk [vmem:[%s3164_s22 + $0x28] sm:$0xf] %vm2202_vm3, %v2571_v19 }
 0x317   : > { %v2055_v36 = vsel %vm3633_vm2, %v2020_v35, 0.0  ;;  %v2054_v18 = vsel %vm3633_vm2, %v2019_v24, 0.0  ;;  %v1808_v35 = vadd.f32 %v3629_v17, %v1769_v12  ;;  %v1807_v24 = vadd.f32 %v3629_v17, %v1768_v1 }
 0x318   : > { %v2574_v45 = vpack.c.bf16 %v2055_v36, %v2055_v36  ;;  %v2573_v25 = vpack.c.bf16 %v2054_v18, %v2054_v18  ;;  %v1925_v0 = vpop.permute.xlu1 %1924  ;;  %v1920_v22 = vpop.permute.xlu0 %1919 }
 0x319   : > { %v2022_v4 = vmul.f32 %v1925_v0, %v1798_v33  ;;  %v2021_v21 = vmul.f32 %v1920_v22, %v1797_v60  ;;  %v1771_v33 = vld [vmem:[#allocation2 + $0xd8] sm:$0xff]  ;;  %v1770_v60 = vld [vmem:[#allocation2 + $0xd0] sm:$0xff] }
 0x31a   : > { %2216 = vst.msk [vmem:[%s3164_s22 + $0x34] sm:$0xf] %vm2202_vm3, %v2574_v45  ;;  %2215 = vst.msk [vmem:[%s3164_s22 + $0x30] sm:$0xf] %vm2202_vm3, %v2573_v25 }
 0x31b   : > { %v2057_v63 = vsel %vm3633_vm2, %v2022_v4, 0.0  ;;  %v2056_v62 = vsel %vm3633_vm2, %v2021_v21, 0.0  ;;  %v1810_v4 = vadd.f32 %v3629_v17, %v1771_v33  ;;  %v1809_v21 = vadd.f32 %v3629_v17, %v1770_v60 }
 0x31c   : > { %v2576_v42 = vpack.c.bf16 %v2057_v63, %v2057_v63  ;;  %v2575_v57 = vpack.c.bf16 %v2056_v62, %v2056_v62  ;;  %v1935_v5 = vpop.permute.xlu1 %1934  ;;  %v1930_v56 = vpop.permute.xlu0 %1929 }
 0x31d   : > { %v2024_v58 = vmul.f32 %v1935_v5, %v1800_v40  ;;  %v2023_v43 = vmul.f32 %v1930_v56, %v1799_v2  ;;  %v1773_v40 = vld [vmem:[#allocation2 + $0xe8] sm:$0xff]  ;;  %v1772_v2 = vld [vmem:[#allocation2 + $0xe0] sm:$0xff] }
 0x31e   : > { %2218 = vst.msk [vmem:[%s3164_s22 + $0x3c] sm:$0xf] %vm2202_vm3, %v2576_v42  ;;  %2217 = vst.msk [vmem:[%s3164_s22 + $0x38] sm:$0xf] %vm2202_vm3, %v2575_v57 }
 0x31f   : > { %v2059_v27 = vsel %vm3633_vm2, %v2024_v58, 0.0  ;;  %v2058_v13 = vsel %vm3633_vm2, %v2023_v43, 0.0  ;;  %v1812_v58 = vadd.f32 %v3629_v17, %v1773_v40  ;;  %v1811_v43 = vadd.f32 %v3629_v17, %v1772_v2 }
 0x320   : > { %v2578_v29 = vpack.c.bf16 %v2059_v27, %v2059_v27  ;;  %v2577_v8 = vpack.c.bf16 %v2058_v13, %v2058_v13  ;;  %v1945_v48 = vpop.permute.xlu1 %1944  ;;  %v1940_v15 = vpop.permute.xlu0 %1939 }
 0x321   : > { %v2026_v52 = vmul.f32 %v1945_v48, %v1802_v6  ;;  %v2025_v30 = vmul.f32 %v1940_v15, %v1801_v61  ;;  %v1775_v6 = vld [vmem:[#allocation2 + $0xf8] sm:$0xff]  ;;  %v1774_v61 = vld [vmem:[#allocation2 + $0xf0] sm:$0xff] }
 0x322   : > { %2220 = vst.msk [vmem:[%s3164_s22 + $0x44] sm:$0xf] %vm2202_vm3, %v2578_v29  ;;  %2219 = vst.msk [vmem:[%s3164_s22 + $0x40] sm:$0xf] %vm2202_vm3, %v2577_v8 }
 0x323   : > { %v2061_v31 = vsel %vm3633_vm2, %v2026_v52, 0.0  ;;  %v2060_v53 = vsel %vm3633_vm2, %v2025_v30, 0.0  ;;  %v1814_v52 = vadd.f32 %v3629_v17, %v1775_v6  ;;  %v1813_v30 = vadd.f32 %v3629_v17, %v1774_v61 }
 0x324   : > { %v2580_v37 = vpack.c.bf16 %v2061_v31, %v2061_v31  ;;  %v2579_v16 = vpack.c.bf16 %v2060_v53, %v2060_v53  ;;  %v1955_v10 = vpop.permute.xlu1 %1954  ;;  %v1950_v51 = vpop.permute.xlu0 %1949 }
 0x325   : > { %v2028_v59 = vmul.f32 %v1955_v10, %v1804_v50  ;;  %v2027_v20 = vmul.f32 %v1950_v51, %v1803_v28 }
 0x326   : > { %2222 = vst.msk [vmem:[%s3164_s22 + $0x4c] sm:$0xf] %vm2202_vm3, %v2580_v37  ;;  %2221 = vst.msk [vmem:[%s3164_s22 + $0x48] sm:$0xf] %vm2202_vm3, %v2579_v16 }
 0x327   : > { %v2063_v34 = vsel %vm3633_vm2, %v2028_v59, 0.0  ;;  %v2062_v11 = vsel %vm3633_vm2, %v2027_v20, 0.0 }
 0x328   : > { %v2582_v14 = vpack.c.bf16 %v2063_v34, %v2063_v34  ;;  %v2581_v9 = vpack.c.bf16 %v2062_v11, %v2062_v11  ;;  %v1965_v3 = vpop.permute.xlu1 %1964  ;;  %v1960_v19 = vpop.permute.xlu0 %1959 }
 0x329   : > { %v2030_v46 = vmul.f32 %v1965_v3, %v1806_v7  ;;  %v2029_v38 = vmul.f32 %v1960_v19, %v1805_v32 }
 0x32a   : > { %2224 = vst.msk [vmem:[%s3164_s22 + $0x54] sm:$0xf] %vm2202_vm3, %v2582_v14  ;;  %2223 = vst.msk [vmem:[%s3164_s22 + $0x50] sm:$0xf] %vm2202_vm3, %v2581_v9 }
 0x32b   : > { %v2065_v47 = vsel %vm3633_vm2, %v2030_v46, 0.0  ;;  %v2064_v54 = vsel %vm3633_vm2, %v2029_v38, 0.0 }
 0x32c   : > { %v2584_v36 = vpack.c.bf16 %v2065_v47, %v2065_v47  ;;  %v2583_v18 = vpack.c.bf16 %v2064_v54, %v2064_v54  ;;  %v1975_v45 = vpop.permute.xlu1 %1974  ;;  %v1970_v25 = vpop.permute.xlu0 %1969 }
 0x32d   : > { %v2032_v0 = vmul.f32 %v1975_v45, %v1808_v35  ;;  %v2031_v22 = vmul.f32 %v1970_v25, %v1807_v24 }
 0x32e   : > { %2226 = vst.msk [vmem:[%s3164_s22 + $0x5c] sm:$0xf] %vm2202_vm3, %v2584_v36  ;;  %2225 = vst.msk [vmem:[%s3164_s22 + $0x58] sm:$0xf] %vm2202_vm3, %v2583_v18 }
 0x32f   : > { %v2067_v26 = vsel %vm3633_vm2, %v2032_v0, 0.0  ;;  %v2066_v23 = vsel %vm3633_vm2, %v2031_v22, 0.0 }
 0x330   : > { %v2586_v63 = vpack.c.bf16 %v2067_v26, %v2067_v26  ;;  %v2585_v62 = vpack.c.bf16 %v2066_v23, %v2066_v23  ;;  %v1985_v42 = vpop.permute.xlu1 %1984  ;;  %v1980_v57 = vpop.permute.xlu0 %1979 }
 0x331   : > { %v2034_v5 = vmul.f32 %v1985_v42, %v1810_v4  ;;  %v2033_v56 = vmul.f32 %v1980_v57, %v1809_v21 }
 0x332   : > { %2228 = vst.msk [vmem:[%s3164_s22 + $0x64] sm:$0xf] %vm2202_vm3, %v2586_v63  ;;  %2227 = vst.msk [vmem:[%s3164_s22 + $0x60] sm:$0xf] %vm2202_vm3, %v2585_v62 }
 0x333   : > { %v2069_v44 = vsel %vm3633_vm2, %v2034_v5, 0.0  ;;  %v2068_v55 = vsel %vm3633_vm2, %v2033_v56, 0.0 }
 0x334   : > { %v2588_v27 = vpack.c.bf16 %v2069_v44, %v2069_v44  ;;  %v2587_v13 = vpack.c.bf16 %v2068_v55, %v2068_v55  ;;  %v1995_v29 = vpop.permute.xlu1 %1994  ;;  %v1990_v8 = vpop.permute.xlu0 %1989 }
 0x335   : > { %v2036_v48 = vmul.f32 %v1995_v29, %v1812_v58  ;;  %v2035_v15 = vmul.f32 %v1990_v8, %v1811_v43 }
 0x336   : > { %2230 = vst.msk [vmem:[%s3164_s22 + $0x6c] sm:$0xf] %vm2202_vm3, %v2588_v27  ;;  %2229 = vst.msk [vmem:[%s3164_s22 + $0x68] sm:$0xf] %vm2202_vm3, %v2587_v13 }
 0x337   : > { %v2071_v50 = vsel %vm3633_vm2, %v2036_v48, 0.0  ;;  %v2070_v28 = vsel %vm3633_vm2, %v2035_v15, 0.0 }
 0x338   : > { %v2590_v49 = vpack.c.bf16 %v2071_v50, %v2071_v50  ;;  %v2589_v39 = vpack.c.bf16 %v2070_v28, %v2070_v28  ;;  %v2005_v31 = vpop.permute.xlu1 %2004  ;;  %v2000_v53 = vpop.permute.xlu0 %1999 }
 0x339   : > { %v2038_v37 = vmul.f32 %v2005_v31, %v1814_v52  ;;  %v2037_v16 = vmul.f32 %v2000_v53, %v1813_v30 }
 0x33a   : > { %2232 = vst.msk [vmem:[%s3164_s22 + $0x74] sm:$0xf] %vm2202_vm3, %v2590_v49  ;;  %2231 = vst.msk [vmem:[%s3164_s22 + $0x70] sm:$0xf] %vm2202_vm3, %v2589_v39 }
 0x33b   : > { %v2073_v17 = vsel %vm3633_vm2, %v2038_v37, 0.0  ;;  %v2072_v10 = vsel %vm3633_vm2, %v2037_v16, 0.0 }
 0x33c   : > { %v2592_v51 = vpack.c.bf16 %v2073_v17, %v2073_v17  ;;  %v2591_v59 = vpack.c.bf16 %v2072_v10, %v2072_v10 }
 0x33e   : > { %2234 = vst.msk [vmem:[%s3164_s22 + $0x7c] sm:$0xf] %vm2202_vm3, %v2592_v51  ;;  %2233 = vst.msk [vmem:[%s3164_s22 + $0x78] sm:$0xf] %vm2202_vm3, %v2591_v59 }
 0x33f PF: > { %s30_s23 = sadd.s32 1, %s2995_s23   ;;  %s3829_s1 = sld [smem:[#allocation7_spill]] }
 0x340   : > { %p27_p9 = scmp.ge.s32.totalorder %s30_s23, 11   ;;  %s3830_s22 = sld [smem:[#allocation8_spill]] }
 0x342   :  { %29 = sbr.rel (!%p27_p9) target bundleno = 28 (0x1c), region = 115 }

</bundles_post_ra>
